<compile_context>
chip_gen: v6e
topology: v6e:2x2x1
jax: 0.10.0
libtpu: 0.0.40
codegen_flags: <defaults>
</compile_context>

<pallas_src>
import jax
import jax.numpy as jnp
from jax.experimental import pallas as pl
from jax.experimental.pallas import tpu as pltpu

EPS = 1e-5   # nn.BatchNorm2d default eps


def _default_vmem_limit():
    """Generation-aware VMEM budget: ~36 MiB on 64-MiB parts (v7x), ~100 MiB on 128-MiB parts."""
    try:
        cap = pltpu.get_tpu_info().vmem_capacity_bytes
    except Exception:
        cap = 64 * 1024 * 1024
    return (36 * 1024 * 1024) if cap <= 64 * 1024 * 1024 else (100 * 1024 * 1024)


_VMEM_LIMIT = _default_vmem_limit()


def _round_up(x, m):
    return ((x + m - 1) // m) * m


def _pick_tk(kp, max_tk=2048):
    """Largest multiple of 128 that divides kp (kp itself a multiple of 128), <= max_tk."""
    best = 128
    n = kp // 128
    for d in range(1, n + 1):
        if n % d == 0 and d * 128 <= max_tk:
            best = d * 128
    return best


def _pick_row_tile(m, max_tile=512):
    """Return (tile, padded_m): tile divides padded_m, padded_m >= m, tile multiple of 16."""
    if m <= max_tile:
        mp = _round_up(m, 16)
        return mp, mp
    for t in (512, 256, 128, 64, 32):
        if t <= max_tile and m % t == 0:
            return t, m
    mp = _round_up(m, max_tile)
    return max_tile, mp


# ----------------------------------------------------------------------------
# Pallas kernels
# ----------------------------------------------------------------------------

def _make_conv3x3_s1_kernel(Wp, Wo, Mq, Cout):
    """Implicit-GEMM 3x3/stride-1/pad-1 conv over one sample, BN stats fused.

    x_ref : [1, Lp, Cin]   flattened spatially-padded sample (bf16)
    w_ref : [9, Cin, Cout] per-tap weight matrices (bf16)
    mask  : [Mq, 1]        1.0 for real output columns, 0.0 for width-padding junk
    o_ref : [1, Mq, Cout]  width-padded conv output (bf16, junk columns zeroed)
    sum/sq: [1, 1, Cout]   per-sample column sum / sum-of-squares (f32)
    """
    def kernel(x_ref, w_ref, mask_ref, o_ref, sum_ref, sq_ref):
        acc = jnp.zeros((Mq, Cout), jnp.float32)
        for t in range(9):                       # static tap loop: 9 row-window matmuls
            i, j = divmod(t, 3)
            a = x_ref[0, pl.ds(i * Wp + j, Mq), :]
            acc = acc + jnp.dot(a, w_ref[t], preferred_element_type=jnp.float32)
        acc = acc * mask_ref[...]                # zero the width-padding junk columns
        o_ref[0] = acc.astype(o_ref.dtype)
        sum_ref[0] = jnp.sum(acc, axis=0, keepdims=True)
        sq_ref[0] = jnp.sum(acc * acc, axis=0, keepdims=True)
    return kernel


def _mm_stats_kernel(a_ref, b_ref, o_ref, sum_ref, sq_ref, acc_ref):
    """C = A @ B (bf16 in, f32 acc, bf16 out) + per-M-tile column sum / sum-of-squares."""
    k = pl.program_id(2)

    @pl.when(k == 0)
    def _():
        acc_ref[...] = jnp.zeros_like(acc_ref)

    acc_ref[...] += jnp.dot(a_ref[...], b_ref[...],
                            preferred_element_type=jnp.float32)

    @pl.when(k == pl.num_programs(2) - 1)
    def _():
        r = acc_ref[...]
        o_ref[...] = r.astype(o_ref.dtype)
        sum_ref[0] = jnp.sum(r, axis=0, keepdims=True)
        sq_ref[0] = jnp.sum(r * r, axis=0, keepdims=True)


def _bn_if_body(x_ref, sc_ref, sh_ref, r_ref, o_ref):
    """Fused BN-affine + multi-step IF neuron (+ optional SEW 'ADD' residual).

    Whole T extent is in the block; the membrane potential stays in registers across
    the (short, statically unrolled) time loop instead of a VMEM scratch per step.
    """
    sc = sc_ref[...]
    sh = sh_ref[...]
    T = x_ref.shape[0]
    v = jnp.zeros(x_ref.shape[1:], jnp.float32)
    for t in range(T):
        v = v + x_ref[t].astype(jnp.float32) * sc + sh    # BN affine + charge
        spike = (v >= 1.0).astype(jnp.float32)            # Heaviside, v_th = 1
        v = v * (1.0 - spike)                             # hard reset to 0
        if r_ref is None:
            o_ref[t] = spike.astype(o_ref.dtype)
        else:                                             # fused SEW 'ADD' residual
            o_ref[t] = (spike + r_ref[t].astype(jnp.float32)).astype(o_ref.dtype)


def _bn_if_kernel(x_ref, sc_ref, sh_ref, o_ref):
    _bn_if_body(x_ref, sc_ref, sh_ref, None, o_ref)


def _bn_if_add_kernel(x_ref, sc_ref, sh_ref, r_ref, o_ref):
    _bn_if_body(x_ref, sc_ref, sh_ref, r_ref, o_ref)


# ----------------------------------------------------------------------------
# Pallas-call wrappers
# ----------------------------------------------------------------------------

def conv3x3_s1_stats(x_nhwc, w_oihw):
    """3x3 stride-1 pad-1 conv, implicit GEMM (no HBM im2col), BN stats fused.

    x_nhwc: [N, H, W, Cin]  -> conv [N, H, W, Cout] bf16, col_sum/col_sq [Cout] f32.
    """
    N, H, W, Cin = x_nhwc.shape
    Cout = w_oihw.shape[0]
    Ho, Wo = H, W
    Hp, Wp = H + 2, W + 2
    Mq = Ho * Wp                                  # width-padded output rows per sample

    xp = jnp.pad(x_nhwc.astype(jnp.bfloat16), ((0, 0), (1, 1), (1, 1), (0, 0)))
    xf = xp.reshape(N, Hp * Wp, Cin)
    Lp = _round_up(max(Hp * Wp, 2 * Wp + 2 + Mq), 8)   # keep the largest tap window in bounds
    if Lp != Hp * Wp:
        xf = jnp.pad(xf, ((0, 0), (0, Lp - Hp * Wp), (0, 0)))

    wm = jnp.transpose(w_oihw, (2, 3, 1, 0)).reshape(9, Cin, Cout).astype(jnp.bfloat16)
    mask = (jnp.arange(Mq) % Wp < Wo).astype(jnp.float32).reshape(Mq, 1)

    out, s, q = pl.pallas_call(
        _make_conv3x3_s1_kernel(Wp, Wo, Mq, Cout),
        out_shape=(jax.ShapeDtypeStruct((N, Mq, Cout), jnp.bfloat16),
                   jax.ShapeDtypeStruct((N, 1, Cout), jnp.float32),
                   jax.ShapeDtypeStruct((N, 1, Cout), jnp.float32)),
        grid_spec=pltpu.PrefetchScalarGridSpec(
            num_scalar_prefetch=0,
            grid=(N,),
            in_specs=[
                pl.BlockSpec((1, Lp, Cin), lambda n: (n, 0, 0)),
                pl.BlockSpec((9, Cin, Cout), lambda n: (0, 0, 0)),
                pl.BlockSpec((Mq, 1), lambda n: (0, 0)),
            ],
            out_specs=[
                pl.BlockSpec((1, Mq, Cout), lambda n: (n, 0, 0)),
                pl.BlockSpec((1, 1, Cout), lambda n: (n, 0, 0)),
                pl.BlockSpec((1, 1, Cout), lambda n: (n, 0, 0)),
            ],
        ),
        compiler_params=pltpu.CompilerParams(
            dimension_semantics=("parallel",),
            vmem_limit_bytes=_VMEM_LIMIT),
    )(xf, wm, mask)

    col_sum = jnp.sum(s[:, 0, :], axis=0)
    col_sq = jnp.sum(q[:, 0, :], axis=0)
    conv = out.reshape(N, Ho, Wp, Cout)[:, :, :Wo, :]     # drop width-padding junk columns
    return conv, col_sum, col_sq


def matmul_stats(a, b):
    """out = a @ b (bf16 MXU, f32 acc, bf16 out); also per-column sum / sum-of-squares."""
    M, K = a.shape
    K2, N = b.shape
    assert K == K2
    Kp = _round_up(K, 128)
    tk = _pick_tk(Kp)
    Np = _round_up(N, 128)
    tm, Mp = _pick_row_tile(M, 512)

    tn = 512 if Np % 512 == 0 else (256 if Np % 256 == 0 else 128)
    if Mp // tm == 1:                     # keep >=2 steps on some parallel axis (v7x: 2 TCs)
        while Np // tn < 2 and tn > 128:
            tn //= 2
        if Np // tn < 2 and tm >= 16 and tm % 16 == 0:
            tm //= 2
    mt, nt, kt = Mp // tm, Np // tn, Kp // tk

    a = a.astype(jnp.bfloat16)
    b = b.astype(jnp.bfloat16)
    if (Mp, Kp) != (M, K):
        a = jnp.pad(a, ((0, Mp - M), (0, Kp - K)))
    if (Kp, Np) != (K, N):
        b = jnp.pad(b, ((0, Kp - K), (0, Np - N)))

    out, s, q = pl.pallas_call(
        _mm_stats_kernel,
        out_shape=(jax.ShapeDtypeStruct((Mp, Np), jnp.bfloat16),
                   jax.ShapeDtypeStruct((mt, 1, Np), jnp.float32),
                   jax.ShapeDtypeStruct((mt, 1, Np), jnp.float32)),
        grid_spec=pltpu.PrefetchScalarGridSpec(
            num_scalar_prefetch=0,
            grid=(mt, nt, kt),
            in_specs=[
                pl.BlockSpec((tm, tk), lambda i, n, k: (i, k)),
                pl.BlockSpec((tk, tn), lambda i, n, k: (k, n)),
            ],
            out_specs=[
                pl.BlockSpec((tm, tn), lambda i, n, k: (i, n)),
                pl.BlockSpec((1, 1, tn), lambda i, n, k: (i, 0, n)),
                pl.BlockSpec((1, 1, tn), lambda i, n, k: (i, 0, n)),
            ],
            scratch_shapes=[pltpu.VMEM((tm, tn), jnp.float32)],
        ),
        compiler_params=pltpu.CompilerParams(
            dimension_semantics=("parallel", "parallel", "arbitrary"),
            vmem_limit_bytes=_VMEM_LIMIT),
    )(a, b)

    col_sum = jnp.sum(s[:, 0, :N], axis=0)
    col_sq = jnp.sum(q[:, 0, :N], axis=0)
    if (Mp, Np) != (M, N):
        out = out[:M, :N]
    return out, col_sum, col_sq


def bn_if(x_tmc, scale, shift, residual=None, out_dtype=jnp.bfloat16):
    """Fused BN-affine + multi-step IF neuron (+ optional fused SEW 'ADD' residual).

    x_tmc: [T, M, C] conv output (bf16/f32); scale/shift: [C]; residual: [T, M, C] or None.
    Returns spikes (+ residual) as [T, M, C] bf16.
    """
    T, M, C = x_tmc.shape
    fold = 1
    if C < 128 and 128 % C == 0 and M % (128 // C) == 0:
        fold = 128 // C                      # fold rows into lanes so stores are lane-dense
    Mf, Cf = M // fold, C * fold
    x = x_tmc.reshape(T, Mf, Cf)
    sc = jnp.tile(scale.astype(jnp.float32), fold).reshape(1, Cf)
    sh = jnp.tile(shift.astype(jnp.float32), fold).reshape(1, Cf)
    res = None
    if residual is not None:
        res = residual.astype(out_dtype).reshape(T, Mf, Cf)

    tm, Mp = _pick_row_tile(Mf, 512)
    if Mp // tm < 2 and tm >= 16 and tm % 16 == 0:
        tm //= 2                             # >=2 parallel grid steps (v7x: 2 TensorCores)
    if Mp != Mf:
        x = jnp.pad(x, ((0, 0), (0, Mp - Mf), (0, 0)))
        if res is not None:
            res = jnp.pad(res, ((0, 0), (0, Mp - Mf), (0, 0)))

    data_spec = pl.BlockSpec((T, tm, Cf), lambda i: (0, i, 0))
    vec_spec = pl.BlockSpec((1, Cf), lambda i: (0, 0))
    if res is None:
        kernel = _bn_if_kernel
        in_specs = [data_spec, vec_spec, vec_spec]
        args = (x, sc, sh)
    else:
        kernel = _bn_if_add_kernel
        in_specs = [data_spec, vec_spec, vec_spec, data_spec]
        args = (x, sc, sh, res)

    out = pl.pallas_call(
        kernel,
        out_shape=jax.ShapeDtypeStruct((T, Mp, Cf), out_dtype),
        grid_spec=pltpu.PrefetchScalarGridSpec(
            num_scalar_prefetch=0,
            grid=(Mp // tm,),                # time recurrence handled inside the kernel
            in_specs=in_specs,
            out_specs=data_spec,
        ),
        compiler_params=pltpu.CompilerParams(
            dimension_semantics=("parallel",),
            vmem_limit_bytes=_VMEM_LIMIT),
    )(*args)
    if Mp != Mf:
        out = out[:, :Mf, :]
    return out.reshape(T, M, C)


# ----------------------------------------------------------------------------
# JAX glue: im2col (strided convs only), conv+BN+IF stage, blocks, model
# ----------------------------------------------------------------------------

def extract_patches(x, kh, kw, stride, pad, pad_value=0.0):
    """x:[N,H,W,C] -> patches [N,Ho,Wo,kh*kw*C] (tap ordering kh, kw, C)."""
    N, H, W, C = x.shape
    Ho = (H + 2 * pad - kh) // stride + 1
    Wo = (W + 2 * pad - kw) // stride + 1
    xp = jnp.pad(x, ((0, 0), (pad, pad), (pad, pad), (0, 0)),
                 constant_values=pad_value)
    cols = []
    for i in range(kh):
        for j in range(kw):
            cols.append(xp[:, i:i + stride * Ho:stride,
                           j:j + stride * Wo:stride, :])
    patches = jnp.concatenate(cols, axis=-1)
    return patches, Ho, Wo


def conv_bn_if(x, w_oihw, gamma, beta, stride, pad, residual=None):
    """Conv2d(bias=False) + BatchNorm2d (train-mode batch stats) + IF neuron,
    optionally with the SEW 'ADD' residual fused into the neuron's spike store.

    x: [T, B, H, W, Cin], w: [Cout, Cin, kh, kw].  Returns [T, B, Ho, Wo, Cout] bf16.
    """
    T, B, H, W, Cin = x.shape
    Cout, _, kh, kw = w_oihw.shape
    xf = x.reshape(T * B, H, W, Cin)

    if kh == 3 and kw == 3 and stride == 1 and pad == 1:
        conv4, col_sum, col_sq = conv3x3_s1_stats(xf, w_oihw)
        Ho, Wo = conv4.shape[1], conv4.shape[2]
        conv = conv4.reshape(T, B * Ho * Wo, Cout)
    else:
        # Stem 7x7/s2 and strided 3x3 / 1x1 convs: im2col + fused-stats matmul.
        # (Note: the raw image is cast to bf16 here — a small approximation on the stem.)
        # TODO(synk): extend the implicit-GEMM kernel to strided convs (strided pl.ds row
        #             windows) to remove this kh*kw patch materialization too.
        patches, Ho, Wo = extract_patches(xf.astype(jnp.bfloat16), kh, kw, stride, pad)
        A = patches.reshape(T * B * Ho * Wo, kh * kw * Cin)
        Wm = jnp.transpose(w_oihw, (2, 3, 1, 0)).reshape(kh * kw * Cin, Cout)
        conv2d, col_sum, col_sq = matmul_stats(A, Wm)
        conv = conv2d.reshape(T, B * Ho * Wo, Cout)

    Mtot = T * B * Ho * Wo
    mean = col_sum / Mtot
    var = jnp.maximum(col_sq / Mtot - mean * mean, 0.0)   # clamp f32 cancellation
    inv = jax.lax.rsqrt(var + EPS)
    scale = gamma * inv
    shift = beta - mean * scale

    res = None if residual is None else residual.reshape(T, B * Ho * Wo, Cout)
    spikes = bn_if(conv, scale, shift, res)
    return spikes.reshape(T, B, Ho, Wo, Cout)


def maxpool_3x3_s2(x):
    """MaxPool2d(kernel=3, stride=2, padding=1) applied per time-step.

    Spikes are >= 0, so 0-valued padding is equivalent to PyTorch's -inf pad.  Uses
    XLA's native reduce_window so the 9 shifted taps are never materialized in HBM.
    """
    # TODO(synk): a Pallas halo-block max kernel could fuse this with the stem bn_if.
    T, B, H, W, C = x.shape
    xf = x.reshape(T * B, H, W, C)
    out = jax.lax.reduce_window(
        xf, jnp.array(0, xf.dtype), jax.lax.max,
        window_dimensions=(1, 3, 3, 1),
        window_strides=(1, 2, 2, 1),
        padding=((0, 0), (1, 1), (1, 1), (0, 0)))
    Ho, Wo = out.shape[1], out.shape[2]
    return out.reshape(T, B, Ho, Wo, C)


def basic_block(x, p):
    """SEW BasicBlock, connect_function='ADD' (residual add fused into conv2's IF store)."""
    out = conv_bn_if(x, p['conv1_w'], p['bn1_g'], p['bn1_b'],
                     stride=p['stride'], pad=1)
    if 'ds_w' in p:
        identity = conv_bn_if(x, p['ds_w'], p['ds_bn_g'], p['ds_bn_b'],
                              stride=p['stride'], pad=0)
    else:
        identity = x
    return conv_bn_if(out, p['conv2_w'], p['bn2_g'], p['bn2_b'],
                      stride=1, pad=1, residual=identity)


def sew_resnet_forward(x_nchw, params, T=2):
    """x_nchw: [B, Cin, H, W] (PyTorch NCHW input) -> logits [B, num_classes]."""
    x = jnp.transpose(x_nchw, (0, 2, 3, 1)).astype(jnp.float32)   # NHWC
    x = jnp.broadcast_to(x[None], (T,) + x.shape)                 # repeat over T

    # stem: conv7x7/2 + BN + sn1, then maxpool 3x3/2
    x = conv_bn_if(x, params['conv1_w'], params['bn1_g'], params['bn1_b'],
                   stride=2, pad=3)
    x = maxpool_3x3_s2(x)

    for li in range(1, 5):
        for blk in params[f'layer{li}']:
            x = basic_block(x, blk)

    # head: AdaptiveAvgPool2d((1,1)) per step, flatten, mean over T, Linear.
    # Operates on [B, 512]-sized data: plain XLA is cheaper than a pallas_call here.
    feat = jnp.mean(x.astype(jnp.float32), axis=(0, 2, 3))        # [B, C]
    logits = feat @ params['head_w'].astype(jnp.float32).T + params['head_b']
    return logits


# ----------------------------------------------------------------------------
# Deterministic parameter init (matches module __init__ shapes / init scheme)
# ----------------------------------------------------------------------------

def kaiming_conv(key, cout, cin, kh, kw):
    fan_out = cout * kh * kw
    std = (2.0 / fan_out) ** 0.5
    return jax.random.normal(key, (cout, cin, kh, kw), jnp.float32) * std


def init_params(key, in_channels=3, num_classes=10, layers=(1, 1, 1, 1)):
    params = {}
    keys = iter(jax.random.split(key, 64))
    params['conv1_w'] = kaiming_conv(next(keys), 64, in_channels, 7, 7)
    params['bn1_g'] = jnp.ones((64,), jnp.float32)
    params['bn1_b'] = jnp.zeros((64,), jnp.float32)

    inplanes = 64
    for li, (planes, blocks, stride) in enumerate(
            zip((64, 128, 256, 512), layers, (1, 2, 2, 2)), start=1):
        blks = []
        for bi in range(blocks):
            s = stride if bi == 0 else 1
            blk = {'stride': s,
                   'conv1_w': kaiming_conv(next(keys), planes, inplanes, 3, 3),
                   'bn1_g': jnp.ones((planes,), jnp.float32),
                   'bn1_b': jnp.zeros((planes,), jnp.float32),
                   'conv2_w': kaiming_conv(next(keys), planes, planes, 3, 3),
                   'bn2_g': jnp.ones((planes,), jnp.float32),
                   'bn2_b': jnp.zeros((planes,), jnp.float32)}
            if bi == 0 and (s != 1 or inplanes != planes):
                blk['ds_w'] = kaiming_conv(next(keys), planes, inplanes, 1, 1)
                blk['ds_bn_g'] = jnp.ones((planes,), jnp.float32)
                blk['ds_bn_b'] = jnp.zeros((planes,), jnp.float32)
            inplanes = planes
            blks.append(blk)
        params[f'layer{li}'] = blks

    fan_in = 512  # 512 * BasicBlock.expansion
    bound = 1.0 / (fan_in ** 0.5)
    kw_, kb_ = jax.random.split(next(keys))
    params['head_w'] = jax.random.uniform(kw_, (num_classes, fan_in),
                                          jnp.float32, -bound, bound)
    params['head_b'] = jax.random.uniform(kb_, (num_classes,),
                                          jnp.float32, -bound, bound)
    return params


if __name__ == "__main__":
    key = jax.random.PRNGKey(0)
    k_param, k_x = jax.random.split(key)

    # config: neuron=IF, num_classes=10, time_step=2, input_channels=3,
    #         connect_function='ADD', groups=1, width_per_group=64,
    #         zero_init_residual=False; block=BasicBlock, layers=[1,1,1,1]
    params = init_params(k_param, in_channels=3, num_classes=10,
                         layers=(1, 1, 1, 1))

    x = jax.random.normal(k_x, (2, 3, 32, 32), jnp.float32)   # [B, Cin, H, W]
    logits = sew_resnet_forward(x, params, T=2)
    logits = jax.block_until_ready(logits)

    assert logits.shape == (2, 10)
    assert bool(jnp.all(jnp.isfinite(logits)))
    print("KERNEL_OK")
</pallas_src>

<mosaic_0001>
module attributes {stable_mosaic.version = 11 : i64} {
  func.func @_mm_stats_kernel(%arg0: i32, %arg1: i32, %arg2: i32, %arg3: memref<512x256xbf16, #tpu.memory_space<vmem>>, %arg4: memref<256x128xbf16, #tpu.memory_space<vmem>>, %arg5: memref<512x128xbf16, #tpu.memory_space<vmem>>, %arg6: memref<1x1x128xf32, #tpu.memory_space<vmem>>, %arg7: memref<1x1x128xf32, #tpu.memory_space<vmem>>, %arg8: memref<512x128xf32, #tpu.memory_space<vmem>>) attributes {dimension_semantics = [#tpu.dimension_semantics<parallel>, #tpu.dimension_semantics<parallel>, #tpu.dimension_semantics<arbitrary>], iteration_bounds = array<i64: 2, 1, 1>, scalar_prefetch = 0 : i64, scratch_operands = 1 : i64, tpu.core_type = #tpu.core_type<tc>, window_params = [{transform_indices = @transform_0, window_bounds = array<i64: 512, 256>}, {transform_indices = @transform_1, window_bounds = array<i64: 256, 128>}, {transform_indices = @transform_2, window_bounds = array<i64: 512, 128>}, {transform_indices = @transform_3, window_bounds = array<i64: 1, 1, 128>}, {transform_indices = @transform_4, window_bounds = array<i64: 1, 1, 128>}]} {
    %c0_i32 = arith.constant 0 : i32
    %0 = arith.cmpi eq, %arg2, %c0_i32 : i32
    %1 = arith.extui %0 : i1 to i32
    %c0_i32_0 = arith.constant 0 : i32
    %2 = arith.cmpi ne, %1, %c0_i32_0 : i32
    scf.if %2 {
      %cst_10 = arith.constant 0.000000e+00 : f32
      %12 = vector.broadcast %cst_10 : f32 to vector<512x128xf32>
      %c0_11 = arith.constant 0 : index
      %c0_12 = arith.constant 0 : index
      %13 = vector.load %arg8[%c0_11, %c0_12] : memref<512x128xf32, #tpu.memory_space<vmem>>, vector<512x128xf32>
      tpu.vector_store %arg8[%c0_11, %c0_12], %12 {strides = array<i32>} : memref<512x128xf32, #tpu.memory_space<vmem>>, vector<512x128xf32>,
    } else {
    }
    %c0 = arith.constant 0 : index
    %c0_1 = arith.constant 0 : index
    %3 = vector.load %arg8[%c0, %c0_1] : memref<512x128xf32, #tpu.memory_space<vmem>>, vector<512x128xf32>
    %c0_2 = arith.constant 0 : index
    %c0_3 = arith.constant 0 : index
    %4 = vector.load %arg3[%c0_2, %c0_3] : memref<512x256xbf16, #tpu.memory_space<vmem>>, vector<512x256xbf16>
    %c0_4 = arith.constant 0 : index
    %c0_5 = arith.constant 0 : index
    %5 = vector.load %arg4[%c0_4, %c0_5] : memref<256x128xbf16, #tpu.memory_space<vmem>>, vector<256x128xbf16>
    %cst = arith.constant dense<0.000000e+00> : vector<512x128xf32>
    %6 = tpu.matmul %4, %5, %cst {dimension_numbers = #tpu.dot_dimension_numbers<[1], [0], [0], [1], [0, 0, 1, 1], [], []>} : vector<512x256xbf16>, vector<256x128xbf16>, vector<512x128xf32> -> vector<512x128xf32>
    %7 = arith.addf %3, %6 : vector<512x128xf32>
    %c0_6 = arith.constant 0 : index
    %c0_7 = arith.constant 0 : index
    %8 = vector.load %arg8[%c0_6, %c0_7] : memref<512x128xf32, #tpu.memory_space<vmem>>, vector<512x128xf32>
    tpu.vector_store %arg8[%c0_6, %c0_7], %7 {strides = array<i32>} : memref<512x128xf32, #tpu.memory_space<vmem>>, vector<512x128xf32>,
    %c0_i32_8 = arith.constant 0 : i32
    %9 = arith.cmpi eq, %arg2, %c0_i32_8 : i32
    %10 = arith.extui %9 : i1 to i32
    %c0_i32_9 = arith.constant 0 : i32
    %11 = arith.cmpi ne, %10, %c0_i32_9 : i32
    scf.if %11 {
      %c0_10 = arith.constant 0 : index
      %c0_11 = arith.constant 0 : index
      %12 = vector.load %arg8[%c0_10, %c0_11] : memref<512x128xf32, #tpu.memory_space<vmem>>, vector<512x128xf32>
      %13 = arith.truncf %12 : vector<512x128xf32> to vector<512x128xbf16>
      %c0_12 = arith.constant 0 : index
      %c0_13 = arith.constant 0 : index
      %14 = vector.load %arg5[%c0_12, %c0_13] : memref<512x128xbf16, #tpu.memory_space<vmem>>, vector<512x128xbf16>
      tpu.vector_store %arg5[%c0_12, %c0_13], %13 {strides = array<i32>} : memref<512x128xbf16, #tpu.memory_space<vmem>>, vector<512x128xbf16>,
      %cst_14 = arith.constant dense<0.000000e+00> : vector<128xf32>
      %15 = vector.multi_reduction <add>, %12, %cst_14 [0] : vector<512x128xf32> to vector<128xf32>
      %16 = vector.shape_cast %15 : vector<128xf32> to vector<1x128xf32>
      %c0_15 = arith.constant 0 : index
      %c0_16 = arith.constant 0 : index
      %c0_17 = arith.constant 0 : index
      %17 = vector.load %arg6[%c0_15, %c0_16, %c0_17] : memref<1x1x128xf32, #tpu.memory_space<vmem>>, vector<1x1x128xf32>
      %18 = vector.shape_cast %17 : vector<1x1x128xf32> to vector<1x128xf32>
      %19 = vector.shape_cast %16 : vector<1x128xf32> to vector<1x1x128xf32>
      tpu.vector_store %arg6[%c0_15, %c0_16, %c0_17], %19 {strides = array<i32>} : memref<1x1x128xf32, #tpu.memory_space<vmem>>, vector<1x1x128xf32>,
      %20 = arith.mulf %12, %12 : vector<512x128xf32>
      %cst_18 = arith.constant dense<0.000000e+00> : vector<128xf32>
      %21 = vector.multi_reduction <add>, %20, %cst_18 [0] : vector<512x128xf32> to vector<128xf32>
      %22 = vector.shape_cast %21 : vector<128xf32> to vector<1x128xf32>
      %c0_19 = arith.constant 0 : index
      %c0_20 = arith.constant 0 : index
      %c0_21 = arith.constant 0 : index
      %23 = vector.load %arg7[%c0_19, %c0_20, %c0_21] : memref<1x1x128xf32, #tpu.memory_space<vmem>>, vector<1x1x128xf32>
      %24 = vector.shape_cast %23 : vector<1x1x128xf32> to vector<1x128xf32>
      %25 = vector.shape_cast %22 : vector<1x128xf32> to vector<1x1x128xf32>
      tpu.vector_store %arg7[%c0_19, %c0_20, %c0_21], %25 {strides = array<i32>} : memref<1x1x128xf32, #tpu.memory_space<vmem>>, vector<1x1x128xf32>,
    } else {
    }
    return
  }
  func.func @transform_0(%arg0: i32, %arg1: i32, %arg2: i32) -> (i32, i32) {
    %c0_i32 = arith.constant 0 : i32
    return %arg0, %arg2 : i32, i32
  }
  func.func @transform_1(%arg0: i32, %arg1: i32, %arg2: i32) -> (i32, i32) {
    %c0_i32 = arith.constant 0 : i32
    return %arg2, %arg1 : i32, i32
  }
  func.func @transform_2(%arg0: i32, %arg1: i32, %arg2: i32) -> (i32, i32) {
    %c0_i32 = arith.constant 0 : i32
    return %arg0, %arg1 : i32, i32
  }
  func.func @transform_3(%arg0: i32, %arg1: i32, %arg2: i32) -> (i32, i32, i32) {
    %c0_i32 = arith.constant 0 : i32
    %c0_i32_0 = arith.constant 0 : i32
    return %arg0, %c0_i32, %arg1 : i32, i32, i32
  }
  func.func @transform_4(%arg0: i32, %arg1: i32, %arg2: i32) -> (i32, i32, i32) {
    %c0_i32 = arith.constant 0 : i32
    %c0_i32_0 = arith.constant 0 : i32
    return %arg0, %c0_i32, %arg1 : i32, i32, i32
  }
}

</mosaic_0001>

<bundles_post_ra>
// kernel: tpu_custom_call.1
= control target key start
LH: loop header
LB: loop body
LE: loop exit
PB: predicated region body
PF: predicated region fallthrough
CT: control target
= control target key end

     0   :  { %s3748_s0 = inlined_call_operand.hbm [shape: bf16[1024,256], index: 0, kind: input, shape index: {}]   ;;  %s3749_s1 = inlined_call_operand.hbm [shape: bf16[256,128], index: 1, kind: input, shape index: {}]   ;;  %s3750_s2 = inlined_call_operand.hbm [shape: bf16[1024,128], index: 2, kind: output, shape index: {0}]   ;;  %s3751_s3 = inlined_call_operand.hbm [shape: f32[2,1,128], index: 3, kind: output, shape index: {1}]   ;;  %s3752_s4 = inlined_call_operand.hbm [shape: f32[2,1,128], index: 4, kind: output, shape index: {2}]  }
   0x1   :  { %3755 = sst [smem:[#allocation16_spill]] %s3749_s1 }
   0x2   :  { %10 = vsyncpa [#allocation4], 0 }
   0x3   :  { %12 = vsyncpa [#allocation4 + $0x1], 0 }
   0x4   :  { %13 = vsyncpa [#allocation7], 0 }
   0x5   :  { %14 = vsyncpa [#allocation5], 0 }
   0x6   :  { %16 = vsyncpa [#allocation5 + $0x1], 0 }
   0x7   :  { %17 = vsyncpa [#allocation10], 0 }
   0x8   :  { %19 = vsyncpa [#allocation10 + $0x1], 0  ;;  %s3043_s15 = smov 0   ;;  %s3045_s16 = smov 0  }
   0x9   :  { %s3047_s17 = smov 0   ;;  %s3049_s18 = smov 0  }
   0xa   :  { %s3051_s19 = smov 0   ;;  %s3053_s20 = smov 0  }
   0xb LB: > { %s3074_s21 = sadd.s32 4294967295, %s3004_s20   ;;  %s3753_s22 = sadd.s32 4294967294, %s3004_s20   ;;  %s3004_s20 = sphi %s3053_s20, %s25_s20   ;;  %s3000_s19 = sphi %s3051_s19, %s3774_s19   ;;  %s2996_s18 = sphi %s3049_s18, %s3773_s18   ;;  %s2992_s17 = sphi %s3047_s17, %s3772_s17   ;;  %s2988_s16 = sphi %s3045_s16, %s3771_s16   ;;  %s2984_s15 = sphi %s3043_s15, %s3770_s15  }
   0xc   : > { %p66_p0 = scmp.ne.s32.totalorder %s2988_s16, %s2984_s15  ;;  %p3754_p1 = scmp.eq.s32.totalorder %s3074_s21, 0 }
   0xd   : > { %p126_p3 = scmp.eq.s32.totalorder %s3753_s22, 1  ;;  %p2156_p5 = scmp.ge.s32.totalorder %s3004_s20, 1 }
   0xe   : > { %p3085_p4 = por %p3754_p1, %p66_p0  ;;  %p189_p7 = scmp.lt.s32.totalorder %s3004_s20, 3 }
   0xf   : > { %p3090_p6 = por %p126_p3, %p66_p0  ;;  %s3006_s26 = smov [#allocation6]  }
  0x10   : > { %p3095_p8 = pnand %p2156_p5, %p189_p7  ;;  %s205_s27 = sshll.u32 %s3006_s26, 4  ;;  %s206_s27 = int_to_ptr.vmem [resolvable:$true] %s205_s27 }
  0x11   : > { %s3757_s24 = scalar_select %p3090_p6, 1, 0 }
  0x12   : > { %p2620_p9 = pneg %p3095_p8  ;;  %s44_s29 = sadd.s32 1, %s3000_s19 }
  0x13   : > { %s2821_s30 = scalar_lea.vmem %s206_s27, 2048  ;;  %p2829_p5 = scmp.lt.s32.totalorder %s206_s27, %s206_s27 }
  0x14   : > { %p3104_p11 = pnand %p2620_p9, %p3754_p1  ;;  %p2822_p13 = scmp.ne.s32.totalorder %s206_s27, %s2821_s30 }
  0x15   : > { %p2830_p7 = scmp.lt.s32.totalorder %s2821_s30, %s2821_s30 }
  0x16   : > { %p2812_p12 = pneg %p3104_p11 }
  0x17   : > { %p2831_p2 = por %p2830_p7, %p2829_p5 }
  0x18   : > { %p2824_p0 = pnand %p2822_p13, %p2812_p12 }
  0x1a   : > { %p2825_p3 = pneg %p2824_p0 }
  0x1c   : > { %p2832_p6 = pnand %p2831_p2, %p2825_p3 }
  0x1e   : > { %2835 = shalt.err (!%p2832_p6)
}
  0x1f   : > { %s3007_s5 = smov 64   ;;  %s3008_s6 = smov 4  }
  0x20   : > { %s3760_s1 = sld [smem:[#allocation16_spill]]  ;;  %p46_p2 = scmp.ge.s32.totalorder %s44_s29, 2 }
  0x21   : > { %s53_s9 = sadd.s32 1, %s2992_s17  ;;  %p60_p6 = scmp.ne.s32.totalorder %s2992_s17, %s2988_s16 }
  0x22   : > { %p61_p9 = scmp.eq.s32.totalorder %s3004_s20, 0  ;;  %s3776_s29 = smov (%p46_p2, %s44_s29), 0 }
  0x23   : > { %p3762_p13 = scmp.eq.s32.totalorder %s3074_s21, 1  ;;  %s48_s12 = ssub.s32 %s3000_s19, %s3776_s29 }
  0x24   : > { %p3122_p12 = por %p61_p9, %p60_p6  ;;  %p2639_p3 = scmp.lt.s32.totalorder %s3004_s20, 2 }
  0x25   : > { %p3128_p0 = por %p3762_p13, %p60_p6  ;;  %s219_s13 = sand.u32 1, %s2992_s17  }
  0x26   : > { %2623 = dma.hbm_to_vmem [thread:$0]  (!%p3104_p11), %s3760_s1, 2048, %s206_s27, [#allocation7], %s3007_s5, %s3007_s5, %s3008_s6  }
  0x27   : > { %p51_p11 = scmp.eq.s32.totalorder %s48_s12, 0  ;;  %s2159_s14 = sshll.u32 %s219_s13, 9 }
  0x28   : > { %s2319_s27 = sshll.u32 %s3000_s19, 13  ;;  %s223_s6 = scalar_lea.vmem [#allocation3], %s2159_s14 }
  0x29   : > { %s3137_s26 = scalar_select %p51_p11, %s2992_s17, %s53_s9  }
  0x2a   : > { %s232_s5 = scalar_lea.hbm %s3748_s0, %s2319_s27  ;;  %s233_s7 = sshll.u32 %s223_s6, 4  ;;  %s234_s7 = int_to_ptr.vmem [resolvable:$true] %s233_s7 }
  0x2b   : > { %p3145_p5 = pnand %p2639_p3, %p3122_p12  ;;  %s220_s22 = scalar_lea.sflag [#allocation4], %s219_s13 }
  0x2c   : > { %s2849_s12 = scalar_lea.vmem %s234_s7, 8192  ;;  %s3009_s9 = smov [#allocation3]  }
  0x2d   : > { %p2838_p7 = pneg %p3145_p5  ;;  %p2850_p2 = scmp.ne.s32.totalorder %s234_s7, %s2849_s12 }
  0x2e   : > { %s2854_s1 = sshll.u32 %s3009_s9, 4  ;;  %s2855_s1 = int_to_ptr.vmem [resolvable:$false] %s2854_s1 }
  0x2f   : > { %p2852_p6 = pnand %p2850_p2, %p2838_p7  ;;  %s2856_s27 = scalar_lea.vmem %s2855_s1, 16384 }
  0x30   : > { %p2857_p13 = scmp.lt.s32.totalorder %s234_s7, %s2855_s1  ;;  %p2858_p11 = scmp.lt.s32.totalorder %s2856_s27, %s2849_s12 }
  0x31   : > { %p2853_p9 = pneg %p2852_p6 }
  0x32   : > { %p2859_p10 = por %p2858_p11, %p2857_p13 }
  0x34   : > { %p2860_p1 = pnand %p2859_p10, %p2853_p9 }
  0x36   : > { %2863 = shalt.err (!%p2860_p1)
}
  0x37   : > { %s3010_s10 = smov 128   ;;  %s3011_s14 = smov 8  }
  0x38   : > { %2627 = dma.hbm_to_vmem [thread:$0]  (!%p3145_p5), %s232_s5, 8192, %s234_s7, %s220_s22, %s3010_s10, %s3010_s10, %s3011_s14  }
  0x39   : > { %245 = sbr.rel (%p3095_p8) target bundleno = 570 (0x23a), region = 28  ;;  %s3156_s13 = sand.u32 (!%p3095_p8), 1, %s2988_s16  }
  0x3a   : > { %s2164_s28 = sshll.u32 (!%p3095_p8), %s3156_s13, 9  ;;  %s248_s1 = scalar_lea.sflag (!%p3095_p8), [#allocation4], %s3156_s13 }
  0x3b   : > { %s3160_s30 = scalar_lea.vmem (!%p3095_p8), [#allocation3], %s2164_s28 }
  0x3e   : > { %2967 = dma.done.wait (%p3085_p4), %s248_s1, 8192  }
  0x3f   : > { %2969 = vsyncadd (%p3085_p4), %s248_s1, 4294959104  ;;  %p3765_p1 = scmp.eq.s32.totalorder %s3074_s21, 0 }
  0x41   : > { %2971 = dma.done.wait (%p3765_p1), [#allocation7], 2048   ;;  %p3766_p8 = pmov %p3765_p1 }
  0x42   : > { %v3012_v0 = vmov 0   ;;  %v2698_v1 = vld [vmem:[#allocation6 + $0x38] sm:$0xff]   ;;  %v2699_v2 = vld [vmem:[#allocation6 + $0x30] sm:$0xff]   ;;  %v2700_v3 = vld [vmem:[#allocation6 + $0x28] sm:$0xff]   ;;  %s2166_s22 = sshll.u32 %s3156_s13, 8  ;;  %s2384_s25 = sshll.u32 %s2996_s18, 12 }
  0x43   : > { %2973 = vsyncadd (%p3766_p8), [#allocation7], 4294965248  ;;  %937 = vmatprep.subr.bf16.mxu0 %v3012_v0  ;;  %2576 = vmatprep.subr.bf16.mxu1 %v3012_v0  ;;  %v2701_v4 = vld [vmem:[#allocation6 + $0x20] sm:$0xff]   ;;  %v2702_v5 = vld [vmem:[#allocation6 + $0x18] sm:$0xff]   ;;  %s3279_s23 = scalar_lea.vmem [#allocation8], %s2166_s22  ;;  %s3530_s8 = scalar_lea.hbm %s3750_s2, %s2384_s25 }
  0x44   : > { %938 = vmatpush1.bf16.msra.mxu0 %v2698_v1  ;;  %2592 = vmatpush1.bf16.msra.mxu1 %v2698_v1  ;;  %v2716_v6 = vld [vmem:[%s3160_s30 + $0x4] ss:$8 sps:$4 sm:$0xff]   ;;  %v2703_v7 = vld [vmem:[#allocation6 + $0x10] sm:$0xff]   ;;  %v2706_v11 = vld [vmem:[#allocation6 + $0x78] sm:$0xff]   ;;  %s1968_s5 = sshll.u32 %s3279_s23, 4  ;;  %s1946_s12 = scalar_lea.sflag [#allocation5], %s3156_s13  ;;  %s3532_s5 = int_to_ptr.vmem [resolvable:$true] %s1968_s5 }
  0x45   : > { %939 = vmatprep.subr.bf16.mxu0 %v3012_v0  ;;  %2577 = vmatprep.subr.bf16.mxu1 %v3012_v0  ;;  %v2704_v8 = vld [vmem:[#allocation6 + $0x8] sm:$0xff]   ;;  %v2705_v9 = vld [vmem:[#allocation6] sm:$0xff]   ;;  %v2707_v12 = vld [vmem:[#allocation6 + $0x70] sm:$0xff]   ;;  %s2864_s9 = scalar_lea.vmem %s3532_s5, 4096  ;;  %s3013_s27 = smov [#allocation8]  }
  0x46   : > { %969 = vmatprep.mubr.bf16.mxu0 %v2716_v6  ;;  %v2740_v10 = vld [vmem:[%s3160_s30 + $0x104] ss:$8 sps:$4 sm:$0xff]   ;;  %v2710_v15 = vld [vmem:[#allocation6 + $0x58] sm:$0xff]   ;;  %v2711_v16 = vld [vmem:[#allocation6 + $0x50] sm:$0xff]   ;;  %p2865_p4 = scmp.ne.s32.totalorder %s3532_s5, %s2864_s9  ;;  %s2868_s10 = sshll.u32 %s3013_s27, 4  ;;  %s2869_s10 = int_to_ptr.vmem [resolvable:$false] %s2868_s10 }
  0x47   : > { %1097 = vmatprep.mubr.bf16.mxu1 %v2740_v10  ;;  %v2708_v13 = vld [vmem:[#allocation6 + $0x68] sm:$0xff]   ;;  %v2709_v14 = vld [vmem:[#allocation6 + $0x60] sm:$0xff]   ;;  %v2717_v21 = vld [vmem:[%s3160_s30 + $0x14] ss:$8 sps:$4 sm:$0xff]   ;;  %s2870_s14 = scalar_lea.vmem %s2869_s10, 8192  ;;  %p2871_p3 = scmp.lt.s32.totalorder %s3532_s5, %s2869_s10 }
  0x48   : > { %940 = vmatpush1.bf16.msra.mxu0 %v2699_v2  ;;  %2593 = vmatpush1.bf16.msra.mxu1 %v2699_v2  ;;  %v2712_v17 = vld [vmem:[#allocation6 + $0x48] sm:$0xff]   ;;  %v2713_v18 = vld [vmem:[#allocation6 + $0x40] sm:$0xff]   ;;  %v2744_v22 = vld [vmem:[%s3160_s30 + $0x114] ss:$8 sps:$4 sm:$0xff]   ;;  %p2866_p10 = pnand %p2865_p4, %p3128_p0  ;;  %p2872_p5 = scmp.lt.s32.totalorder %s2870_s14, %s2864_s9 }
  0x49   : > { %941 = vmatprep.subr.bf16.mxu0 %v3012_v0  ;;  %2578 = vmatprep.subr.bf16.mxu1 %v3012_v0  ;;  %v2714_v19 = vld [vmem:[%s3160_s30] ss:$8 sps:$4 sm:$0xff]   ;;  %v2719_v23 = vld [vmem:[%s3160_s30 + $0x10] ss:$8 sps:$4 sm:$0xff]   ;;  %v2720_v25 = vld [vmem:[%s3160_s30 + $0x24] ss:$8 sps:$4 sm:$0xff]  }
  0x4a   : > { %v2738_v20 = vld [vmem:[%s3160_s30 + $0x100] ss:$8 sps:$4 sm:$0xff]   ;;  %v2746_v24 = vld [vmem:[%s3160_s30 + $0x110] ss:$8 sps:$4 sm:$0xff]   ;;  %v2750_v26 = vld [vmem:[%s3160_s30 + $0x124] ss:$8 sps:$4 sm:$0xff]   ;;  %p2867_p12 = pneg %p2866_p10  ;;  %p2873_p7 = por %p2872_p5, %p2871_p3 }
  0x4b   : > { %v2722_v27 = vld [vmem:[%s3160_s30 + $0x20] ss:$8 sps:$4 sm:$0xff]   ;;  %v2723_v29 = vld [vmem:[%s3160_s30 + $0x34] ss:$8 sps:$4 sm:$0xff]   ;;  %v2725_v31 = vld [vmem:[%s3160_s30 + $0x30] ss:$8 sps:$4 sm:$0xff]  }
  0x4c   : > { %942 = vmatpush1.bf16.msra.mxu0 %v2700_v3  ;;  %2594 = vmatpush1.bf16.msra.mxu1 %v2700_v3  ;;  %v2752_v28 = vld [vmem:[%s3160_s30 + $0x120] ss:$8 sps:$4 sm:$0xff]   ;;  %v2756_v30 = vld [vmem:[%s3160_s30 + $0x134] ss:$8 sps:$4 sm:$0xff]   ;;  %v2758_v32 = vld [vmem:[%s3160_s30 + $0x130] ss:$8 sps:$4 sm:$0xff]   ;;  %p2874_p2 = pnand %p2873_p7, %p2867_p12 }
  0x4d   : > { %943 = vmatprep.subr.bf16.mxu0 %v3012_v0  ;;  %2579 = vmatprep.subr.bf16.mxu1 %v3012_v0  ;;  %v2726_v33 = vld [vmem:[%s3160_s30 + $0x44] ss:$8 sps:$4 sm:$0xff]   ;;  %v2728_v35 = vld [vmem:[%s3160_s30 + $0x40] ss:$8 sps:$4 sm:$0xff]   ;;  %v2729_v37 = vld [vmem:[%s3160_s30 + $0x54] ss:$8 sps:$4 sm:$0xff]  }
  0x4e   : > { %v2762_v34 = vld [vmem:[%s3160_s30 + $0x144] ss:$8 sps:$4 sm:$0xff]   ;;  %v2764_v36 = vld [vmem:[%s3160_s30 + $0x140] ss:$8 sps:$4 sm:$0xff]   ;;  %v2768_v38 = vld [vmem:[%s3160_s30 + $0x154] ss:$8 sps:$4 sm:$0xff]  }
  0x4f   : > { %v2731_v39 = vld [vmem:[%s3160_s30 + $0x50] ss:$8 sps:$4 sm:$0xff]   ;;  %v2732_v41 = vld [vmem:[%s3160_s30 + $0x64] ss:$8 sps:$4 sm:$0xff]   ;;  %v2734_v43 = vld [vmem:[%s3160_s30 + $0x60] ss:$8 sps:$4 sm:$0xff]  }
  0x50   : > { %944 = vmatpush1.bf16.msra.mxu0 %v2701_v4  ;;  %2595 = vmatpush1.bf16.msra.mxu1 %v2701_v4  ;;  %v2770_v40 = vld [vmem:[%s3160_s30 + $0x150] ss:$8 sps:$4 sm:$0xff]   ;;  %v2774_v42 = vld [vmem:[%s3160_s30 + $0x164] ss:$8 sps:$4 sm:$0xff]   ;;  %v2776_v44 = vld [vmem:[%s3160_s30 + $0x160] ss:$8 sps:$4 sm:$0xff]  }
  0x51   : > { %945 = vmatprep.subr.bf16.mxu0 %v3012_v0  ;;  %2580 = vmatprep.subr.bf16.mxu1 %v3012_v0  ;;  %v2735_v45 = vld [vmem:[%s3160_s30 + $0x74] ss:$8 sps:$4 sm:$0xff]   ;;  %v2737_v47 = vld [vmem:[%s3160_s30 + $0x70] ss:$8 sps:$4 sm:$0xff]   ;;  %v2741_v49 = vld [vmem:[%s3160_s30 + $0x84] ss:$8 sps:$4 sm:$0xff]  }
  0x52   : > { %v2780_v46 = vld [vmem:[%s3160_s30 + $0x174] ss:$8 sps:$4 sm:$0xff]   ;;  %v2782_v48 = vld [vmem:[%s3160_s30 + $0x170] ss:$8 sps:$4 sm:$0xff]   ;;  %v2786_v50 = vld [vmem:[%s3160_s30 + $0x184] ss:$8 sps:$4 sm:$0xff]  }
  0x53   : > { %v2743_v51 = vld [vmem:[%s3160_s30 + $0x80] ss:$8 sps:$4 sm:$0xff]   ;;  %v2747_v53 = vld [vmem:[%s3160_s30 + $0x94] ss:$8 sps:$4 sm:$0xff]   ;;  %v2749_v55 = vld [vmem:[%s3160_s30 + $0x90] ss:$8 sps:$4 sm:$0xff]  }
  0x54   : > { %946 = vmatpush1.bf16.msra.mxu0 %v2702_v5  ;;  %2596 = vmatpush1.bf16.msra.mxu1 %v2702_v5  ;;  %v2788_v52 = vld [vmem:[%s3160_s30 + $0x180] ss:$8 sps:$4 sm:$0xff]   ;;  %v2789_v54 = vld [vmem:[%s3160_s30 + $0x194] ss:$8 sps:$4 sm:$0xff]   ;;  %v2791_v56 = vld [vmem:[%s3160_s30 + $0x190] ss:$8 sps:$4 sm:$0xff]  }
  0x55   : > { %947 = vmatprep.subr.bf16.mxu0 %v3012_v0  ;;  %2581 = vmatprep.subr.bf16.mxu1 %v3012_v0  ;;  %v2753_v57 = vld [vmem:[%s3160_s30 + $0xa4] ss:$8 sps:$4 sm:$0xff]   ;;  %v2755_v59 = vld [vmem:[%s3160_s30 + $0xa0] ss:$8 sps:$4 sm:$0xff]   ;;  %v2759_v61 = vld [vmem:[%s3160_s30 + $0xb4] ss:$8 sps:$4 sm:$0xff]  }
  0x56   : > { %v2792_v58 = vld [vmem:[%s3160_s30 + $0x1a4] ss:$8 sps:$4 sm:$0xff]   ;;  %v2794_v60 = vld [vmem:[%s3160_s30 + $0x1a0] ss:$8 sps:$4 sm:$0xff]   ;;  %v2795_v62 = vld [vmem:[%s3160_s30 + $0x1b4] ss:$8 sps:$4 sm:$0xff]  }
  0x57   : > { %v2761_v63 = vld [vmem:[%s3160_s30 + $0xb0] ss:$8 sps:$4 sm:$0xff]   ;;  %v2765_v1 = vld [vmem:[%s3160_s30 + $0xc4] ss:$8 sps:$4 sm:$0xff]   ;;  %v2767_v3 = vld [vmem:[%s3160_s30 + $0xc0] ss:$8 sps:$4 sm:$0xff]  }
  0x58   : > { %948 = vmatpush1.bf16.msra.mxu0 %v2703_v7  ;;  %2597 = vmatpush1.bf16.msra.mxu1 %v2703_v7  ;;  %v2798_v2 = vld [vmem:[%s3160_s30 + $0x1c4] ss:$8 sps:$4 sm:$0xff]   ;;  %v2800_v4 = vld [vmem:[%s3160_s30 + $0x1c0] ss:$8 sps:$4 sm:$0xff]   ;;  %v2771_v5 = vld [vmem:[%s3160_s30 + $0xd4] ss:$8 sps:$4 sm:$0xff]  }
  0x59   : > { %949 = vmatprep.subr.bf16.mxu0 %v3012_v0  ;;  %2582 = vmatprep.subr.bf16.mxu1 %v3012_v0  ;;  %v2801_v6 = vld [vmem:[%s3160_s30 + $0x1d4] ss:$8 sps:$4 sm:$0xff]   ;;  %v2773_v7 = vld [vmem:[%s3160_s30 + $0xd0] ss:$8 sps:$4 sm:$0xff]   ;;  %v2804_v10 = vld [vmem:[%s3160_s30 + $0x1e4] ss:$8 sps:$4 sm:$0xff]  }
  0x5c   : > { %950 = vmatpush1.bf16.msra.mxu0 %v2704_v8  ;;  %2598 = vmatpush1.bf16.msra.mxu1 %v2704_v8  ;;  %v2803_v8 = vld [vmem:[%s3160_s30 + $0x1d0] ss:$8 sps:$4 sm:$0xff]  }
  0x5d   : > { %951 = vmatprep.subr.bf16.mxu0 %v3012_v0  ;;  %2583 = vmatprep.subr.bf16.mxu1 %v3012_v0 }
  0x60   : > { %952 = vmatpush1.bf16.msra.mxu0 %v2705_v9  ;;  %2599 = vmatpush1.bf16.msra.mxu1 %v2705_v9  ;;  %v2777_v9 = vld [vmem:[%s3160_s30 + $0xe4] ss:$8 sps:$4 sm:$0xff]  }
  0x61   : > { %953 = vmatprep.subr.bf16.mxu0 %v3012_v0  ;;  %2584 = vmatprep.subr.bf16.mxu1 %v3012_v0 }
  0x64   : > { %954 = vmatpush2.bf16.msra.mxu0 %v2706_v11  ;;  %2600 = vmatpush2.bf16.msra.mxu1 %v2706_v11  ;;  %v2779_v11 = vld [vmem:[%s3160_s30 + $0xe0] ss:$8 sps:$4 sm:$0xff]  }
  0x65   : > { %955 = vmatprep.subr.bf16.mxu0 %v3012_v0  ;;  %2585 = vmatprep.subr.bf16.mxu1 %v3012_v0 }
  0x68   : > { %956 = vmatpush2.bf16.msra.mxu0 %v2707_v12  ;;  %2601 = vmatpush2.bf16.msra.mxu1 %v2707_v12  ;;  %v2806_v12 = vld [vmem:[%s3160_s30 + $0x1e0] ss:$8 sps:$4 sm:$0xff]  }
  0x69   : > { %957 = vmatprep.subr.bf16.mxu0 %v3012_v0  ;;  %2586 = vmatprep.subr.bf16.mxu1 %v3012_v0 }
  0x6c   : > { %958 = vmatpush2.bf16.msra.mxu0 %v2708_v13  ;;  %2602 = vmatpush2.bf16.msra.mxu1 %v2708_v13  ;;  %v2783_v13 = vld [vmem:[%s3160_s30 + $0xf4] ss:$8 sps:$4 sm:$0xff]  }
  0x6d   : > { %959 = vmatprep.subr.bf16.mxu0 %v3012_v0  ;;  %2587 = vmatprep.subr.bf16.mxu1 %v3012_v0 }
  0x70   : > { %960 = vmatpush2.bf16.msra.mxu0 %v2709_v14  ;;  %2603 = vmatpush2.bf16.msra.mxu1 %v2709_v14  ;;  %v2807_v14 = vld [vmem:[%s3160_s30 + $0x1f4] ss:$8 sps:$4 sm:$0xff]  }
  0x71   : > { %961 = vmatprep.subr.bf16.mxu0 %v3012_v0  ;;  %2588 = vmatprep.subr.bf16.mxu1 %v3012_v0 }
  0x74   : > { %962 = vmatpush2.bf16.msra.mxu0 %v2710_v15  ;;  %2604 = vmatpush2.bf16.msra.mxu1 %v2710_v15  ;;  %v2785_v15 = vld [vmem:[%s3160_s30 + $0xf0] ss:$8 sps:$4 sm:$0xff]  }
  0x75   : > { %963 = vmatprep.subr.bf16.mxu0 %v3012_v0  ;;  %2589 = vmatprep.subr.bf16.mxu1 %v3012_v0 }
  0x78   : > { %964 = vmatpush2.bf16.msra.mxu0 %v2711_v16  ;;  %2605 = vmatpush2.bf16.msra.mxu1 %v2711_v16  ;;  %v2809_v16 = vld [vmem:[%s3160_s30 + $0x1f0] ss:$8 sps:$4 sm:$0xff]  }
  0x79   : > { %965 = vmatprep.subr.bf16.mxu0 %v3012_v0  ;;  %2590 = vmatprep.subr.bf16.mxu1 %v3012_v0 }
  0x7c   : > { %966 = vmatpush2.bf16.msra.mxu0 %v2712_v17  ;;  %2606 = vmatpush2.bf16.msra.mxu1 %v2712_v17 }
  0x7d   : > { %967 = vmatprep.subr.bf16.mxu0 %v3012_v0  ;;  %2591 = vmatprep.subr.bf16.mxu1 %v3012_v0  ;;  %v2797_v0 = vld [vmem:[%s3160_s30 + $0x1b0] ss:$8 sps:$4 sm:$0xff]  }
  0x80   : > { %968 = vmatpush2.bf16.msra.mxu0 %v2713_v18  ;;  %2607 = vmatpush2.bf16.msra.mxu1 %v2713_v18 }
  0x83   : > { %970 = vmatmul.mubr.bf16.vlgmr.msra.gmra.mxu0 %v2714_v19  ;;  %1098 = vmatmul.mubr.bf16.vlgmr.msra.gmra.mxu1 %v2738_v20 }
  0x84   : > { %977 = vmatprep.mubr.bf16.mxu0 %v2717_v21  ;;  %1105 = vmatprep.mubr.bf16.mxu1 %v2744_v22 }
  0x8b   : > { %978 = vmatmul.mubr.bf16.gmra.mxu0 %v2719_v23  ;;  %1106 = vmatmul.mubr.bf16.gmra.mxu1 %v2746_v24 }
  0x8c   : > { %985 = vmatprep.mubr.bf16.mxu0 %v2720_v25  ;;  %1113 = vmatprep.mubr.bf16.mxu1 %v2750_v26 }
  0x93   : > { %986 = vmatmul.mubr.bf16.gmra.mxu0 %v2722_v27  ;;  %1114 = vmatmul.mubr.bf16.gmra.mxu1 %v2752_v28 }
  0x94   : > { %993 = vmatprep.mubr.bf16.mxu0 %v2723_v29  ;;  %1121 = vmatprep.mubr.bf16.mxu1 %v2756_v30 }
  0x9b   : > { %994 = vmatmul.mubr.bf16.gmra.mxu0 %v2725_v31  ;;  %1122 = vmatmul.mubr.bf16.gmra.mxu1 %v2758_v32 }
  0x9c   : > { %1001 = vmatprep.mubr.bf16.mxu0 %v2726_v33  ;;  %1129 = vmatprep.mubr.bf16.mxu1 %v2762_v34 }
  0xa3   : > { %1002 = vmatmul.mubr.bf16.gmra.mxu0 %v2728_v35  ;;  %1130 = vmatmul.mubr.bf16.gmra.mxu1 %v2764_v36 }
  0xa4   : > { %1009 = vmatprep.mubr.bf16.mxu0 %v2729_v37  ;;  %1137 = vmatprep.mubr.bf16.mxu1 %v2768_v38 }
  0xab   : > { %1010 = vmatmul.mubr.bf16.gmra.mxu0 %v2731_v39  ;;  %1138 = vmatmul.mubr.bf16.gmra.mxu1 %v2770_v40 }
  0xac   : > { %1017 = vmatprep.mubr.bf16.mxu0 %v2732_v41  ;;  %1145 = vmatprep.mubr.bf16.mxu1 %v2774_v42 }
  0xb3   : > { %1018 = vmatmul.mubr.bf16.gmra.mxu0 %v2734_v43  ;;  %1146 = vmatmul.mubr.bf16.gmra.mxu1 %v2776_v44 }
  0xb4   : > { %1025 = vmatprep.mubr.bf16.mxu0 %v2735_v45  ;;  %1153 = vmatprep.mubr.bf16.mxu1 %v2780_v46 }
  0xbb   : > { %1026 = vmatmul.mubr.bf16.gmra.mxu0 %v2737_v47  ;;  %1154 = vmatmul.mubr.bf16.gmra.mxu1 %v2782_v48 }
  0xbc   : > { %1033 = vmatprep.mubr.bf16.mxu0 %v2741_v49  ;;  %1161 = vmatprep.mubr.bf16.mxu1 %v2786_v50 }
  0xc3   : > { %1034 = vmatmul.mubr.bf16.gmra.mxu0 %v2743_v51  ;;  %1162 = vmatmul.mubr.bf16.gmra.mxu1 %v2788_v52 }
  0xc4   : > { %1041 = vmatprep.mubr.bf16.mxu0 %v2747_v53  ;;  %1169 = vmatprep.mubr.bf16.mxu1 %v2789_v54 }
  0xcb   : > { %1042 = vmatmul.mubr.bf16.gmra.mxu0 %v2749_v55  ;;  %1170 = vmatmul.mubr.bf16.gmra.mxu1 %v2791_v56 }
  0xcc   : > { %1049 = vmatprep.mubr.bf16.mxu0 %v2753_v57  ;;  %1177 = vmatprep.mubr.bf16.mxu1 %v2792_v58 }
  0xd3   : > { %1050 = vmatmul.mubr.bf16.gmra.mxu0 %v2755_v59  ;;  %1178 = vmatmul.mubr.bf16.gmra.mxu1 %v2794_v60 }
  0xd4   : > { %1057 = vmatprep.mubr.bf16.mxu0 %v2759_v61  ;;  %1185 = vmatprep.mubr.bf16.mxu1 %v2795_v62 }
  0xdb   : > { %1058 = vmatmul.mubr.bf16.gmra.mxu0 %v2761_v63  ;;  %1186 = vmatmul.mubr.bf16.gmra.mxu1 %v2797_v0 }
  0xdc   : > { %1065 = vmatprep.mubr.bf16.mxu0 %v2765_v1  ;;  %1193 = vmatprep.mubr.bf16.mxu1 %v2798_v2 }
  0xe3   : > { %1066 = vmatmul.mubr.bf16.gmra.mxu0 %v2767_v3  ;;  %1194 = vmatmul.mubr.bf16.gmra.mxu1 %v2800_v4 }
  0xe4   : > { %1073 = vmatprep.mubr.bf16.mxu0 %v2771_v5  ;;  %1201 = vmatprep.mubr.bf16.mxu1 %v2801_v6 }
  0xeb   : > { %1074 = vmatmul.mubr.bf16.gmra.mxu0 %v2773_v7  ;;  %1202 = vmatmul.mubr.bf16.gmra.mxu1 %v2803_v8 }
  0xec   : > { %1081 = vmatprep.mubr.bf16.mxu0 %v2777_v9  ;;  %1209 = vmatprep.mubr.bf16.mxu1 %v2804_v10 }
  0xf3   : > { %1082 = vmatmul.mubr.bf16.gmra.mxu0 %v2779_v11  ;;  %1210 = vmatmul.mubr.bf16.gmra.mxu1 %v2806_v12 }
  0xf4   : > { %1089 = vmatprep.mubr.bf16.mxu0 %v2783_v13  ;;  %1217 = vmatprep.mubr.bf16.mxu1 %v2807_v14 }
  0xfb   : > { %1090 = vmatmul.mubr.bf16.gmra.mxu0 %v2785_v15  ;;  %1218 = vmatmul.mubr.bf16.gmra.mxu1 %v2809_v16 }
 0x143   : > { %v3266_v17 = vpop.f32.mrf.mxu0  ;;  %v3268_v18 = vpop.f32.mrf.mxu1 }
 0x145   : > { %v973_v19 = vpop.f32.mrf.mxu0  ;;  %v1101_v20 = vpop.f32.mrf.mxu1 }
 0x147   : > { %v3271_v21 = vpop.f32.mrf.mxu0  ;;  %v3273_v22 = vpop.f32.mrf.mxu1 }
 0x148   : > { %v2388_v23 = vpack.c.bf16 %v3271_v21, %v3266_v17  ;;  %v2468_v24 = vpack.c.bf16 %v3273_v22, %v3268_v18 }
 0x149   : > { %v976_v25 = vpop.f32.mrf.mxu0  ;;  %v1104_v26 = vpop.f32.mrf.mxu1 }
 0x14a   : > { %2389 = vst [vmem:[%s3279_s23] sm:$0xff] %v2388_v23   ;;  %2560 = vst [vmem:[%s3279_s23 + $0x80] sm:$0xff] %v2468_v24  }
 0x14b   : > { %v3283_v27 = vpop.f32.mrf.mxu0  ;;  %v3285_v28 = vpop.f32.mrf.mxu1 }
 0x14d   : > { %v981_v29 = vpop.f32.mrf.mxu0  ;;  %v1109_v30 = vpop.f32.mrf.mxu1 }
 0x14f   : > { %v3287_v31 = vpop.f32.mrf.mxu0  ;;  %v3289_v32 = vpop.f32.mrf.mxu1 }
 0x150   : > { %v2393_v33 = vpack.c.bf16 %v3287_v31, %v3283_v27  ;;  %v2473_v34 = vpack.c.bf16 %v3289_v32, %v3285_v28 }
 0x151   : > { %v984_v35 = vpop.f32.mrf.mxu0  ;;  %v1112_v36 = vpop.f32.mrf.mxu1 }
 0x152   : > { %2545 = vst [vmem:[%s3279_s23 + $0x8] sm:$0xff] %v2393_v33   ;;  %2561 = vst [vmem:[%s3279_s23 + $0x88] sm:$0xff] %v2473_v34  }
 0x153   : > { %v3297_v37 = vpop.f32.mrf.mxu0  ;;  %v3299_v38 = vpop.f32.mrf.mxu1 }
 0x155   : > { %v989_v39 = vpop.f32.mrf.mxu0  ;;  %v1117_v40 = vpop.f32.mrf.mxu1 }
 0x157   : > { %v3301_v41 = vpop.f32.mrf.mxu0  ;;  %v3303_v42 = vpop.f32.mrf.mxu1 }
 0x158   : > { %v2398_v43 = vpack.c.bf16 %v3301_v41, %v3297_v37  ;;  %v2478_v44 = vpack.c.bf16 %v3303_v42, %v3299_v38 }
 0x159   : > { %v992_v45 = vpop.f32.mrf.mxu0  ;;  %v1120_v46 = vpop.f32.mrf.mxu1 }
 0x15a   : > { %2546 = vst [vmem:[%s3279_s23 + $0x10] sm:$0xff] %v2398_v43   ;;  %2562 = vst [vmem:[%s3279_s23 + $0x90] sm:$0xff] %v2478_v44   ;;  %v1812_v43 = vmul.f32 %v3271_v21, %v3271_v21  ;;  %v1811_v46 = vmul.f32 %v3266_v17, %v3266_v17 }
 0x15b   : > { %v3311_v47 = vpop.f32.mrf.mxu0  ;;  %v3313_v48 = vpop.f32.mrf.mxu1 }
 0x15d   : > { %v997_v49 = vpop.f32.mrf.mxu0  ;;  %v1125_v50 = vpop.f32.mrf.mxu1 }
 0x15e   : > { %v1813_v49 = vmul.f32 %v3283_v27, %v3283_v27 }
 0x15f   : > { %v3315_v51 = vpop.f32.mrf.mxu0  ;;  %v3317_v52 = vpop.f32.mrf.mxu1 }
 0x160   : > { %v2403_v53 = vpack.c.bf16 %v3315_v51, %v3311_v47  ;;  %v2483_v54 = vpack.c.bf16 %v3317_v52, %v3313_v48 }
 0x161   : > { %v1000_v55 = vpop.f32.mrf.mxu0  ;;  %v1128_v56 = vpop.f32.mrf.mxu1 }
 0x162   : > { %2547 = vst [vmem:[%s3279_s23 + $0x18] sm:$0xff] %v2403_v53   ;;  %2563 = vst [vmem:[%s3279_s23 + $0x98] sm:$0xff] %v2483_v54   ;;  %v1741_v54 = vadd.f32 %v3271_v21, %v3266_v17  ;;  %v1875_v55 = vadd.f32 %v1812_v43, %v1811_v46  ;;  %v1814_v56 = vmul.f32 %v3287_v31, %v3287_v31 }
 0x163   : > { %v3325_v57 = vpop.f32.mrf.mxu0  ;;  %v3327_v58 = vpop.f32.mrf.mxu1 }
 0x165   : > { %v1005_v59 = vpop.f32.mrf.mxu0  ;;  %v1133_v60 = vpop.f32.mrf.mxu1 }
 0x167   : > { %v3329_v61 = vpop.f32.mrf.mxu0  ;;  %v3331_v62 = vpop.f32.mrf.mxu1 }
 0x168   : > { %v2408_v63 = vpack.c.bf16 %v3329_v61, %v3325_v57  ;;  %v2488_v0 = vpack.c.bf16 %v3331_v62, %v3327_v58 }
 0x169   : > { %v1008_v1 = vpop.f32.mrf.mxu0  ;;  %v1136_v2 = vpop.f32.mrf.mxu1 }
 0x16a   : > { %2548 = vst [vmem:[%s3279_s23 + $0x20] sm:$0xff] %v2408_v63   ;;  %2564 = vst [vmem:[%s3279_s23 + $0xa0] sm:$0xff] %v2488_v0   ;;  %v1742_v63 = vadd.f32 %v1741_v54, %v3283_v27  ;;  %v1876_v0 = vadd.f32 %v1875_v55, %v1813_v49  ;;  %v1815_v1 = vmul.f32 %v3297_v37, %v3297_v37 }
 0x16b   : > { %v3339_v3 = vpop.f32.mrf.mxu0  ;;  %v3341_v4 = vpop.f32.mrf.mxu1  ;;  %v1816_v27 = vmul.f32 %v3301_v41, %v3301_v41 }
 0x16c   : > { %v1743_v17 = vadd.f32 %v1742_v63, %v3287_v31  ;;  %v1817_v31 = vmul.f32 %v3311_v47, %v3311_v47 }
 0x16d   : > { %v1013_v5 = vpop.f32.mrf.mxu0  ;;  %v1141_v6 = vpop.f32.mrf.mxu1 }
 0x16f   : > { %v3343_v7 = vpop.f32.mrf.mxu0  ;;  %v3345_v8 = vpop.f32.mrf.mxu1 }
 0x170   : > { %v2413_v9 = vpack.c.bf16 %v3343_v7, %v3339_v3  ;;  %v2493_v10 = vpack.c.bf16 %v3345_v8, %v3341_v4 }
 0x171   : > { %v1016_v11 = vpop.f32.mrf.mxu0  ;;  %v1144_v12 = vpop.f32.mrf.mxu1 }
 0x172   : > { %2549 = vst [vmem:[%s3279_s23 + $0x28] sm:$0xff] %v2413_v9   ;;  %2565 = vst [vmem:[%s3279_s23 + $0xa8] sm:$0xff] %v2493_v10   ;;  %v1877_v9 = vadd.f32 %v1876_v0, %v1814_v56  ;;  %v1744_v12 = vadd.f32 %v1743_v17, %v3297_v37  ;;  %v1822_v17 = vmul.f32 %v3343_v7, %v3343_v7 }
 0x173   : > { %v3353_v13 = vpop.f32.mrf.mxu0  ;;  %v3355_v14 = vpop.f32.mrf.mxu1 }
 0x175   : > { %v1021_v15 = vpop.f32.mrf.mxu0  ;;  %v1149_v16 = vpop.f32.mrf.mxu1 }
 0x176   : > { %v1878_v15 = vadd.f32 %v1877_v9, %v1815_v1 }
 0x177   : > { %v3357_v19 = vpop.f32.mrf.mxu0  ;;  %v3359_v20 = vpop.f32.mrf.mxu1 }
 0x178   : > { %v2418_v23 = vpack.c.bf16 %v3357_v19, %v3353_v13  ;;  %v2498_v24 = vpack.c.bf16 %v3359_v20, %v3355_v14 }
 0x179   : > { %v1024_v25 = vpop.f32.mrf.mxu0  ;;  %v1152_v26 = vpop.f32.mrf.mxu1 }
 0x17a   : > { %2550 = vst [vmem:[%s3279_s23 + $0x30] sm:$0xff] %v2418_v23   ;;  %2566 = vst [vmem:[%s3279_s23 + $0xb0] sm:$0xff] %v2498_v24   ;;  %v1745_v24 = vadd.f32 %v1744_v12, %v3301_v41  ;;  %v1879_v25 = vadd.f32 %v1878_v15, %v1816_v27  ;;  %v1818_v26 = vmul.f32 %v3315_v51, %v3315_v51 }
 0x17b   : > { %v3367_v29 = vpop.f32.mrf.mxu0  ;;  %v3369_v30 = vpop.f32.mrf.mxu1  ;;  %v1823_v27 = vmul.f32 %v3353_v13, %v3353_v13 }
 0x17d   : > { %v1029_v33 = vpop.f32.mrf.mxu0  ;;  %v1157_v34 = vpop.f32.mrf.mxu1 }
 0x17e   : > { %v1746_v34 = vadd.f32 %v1745_v24, %v3311_v47  ;;  %v1820_v47 = vmul.f32 %v3329_v61, %v3329_v61 }
 0x17f   : > { %v3371_v35 = vpop.f32.mrf.mxu0  ;;  %v3373_v36 = vpop.f32.mrf.mxu1 }
 0x180   : > { %v2423_v39 = vpack.c.bf16 %v3371_v35, %v3367_v29  ;;  %v2503_v40 = vpack.c.bf16 %v3373_v36, %v3369_v30  ;;  %v1747_v41 = vadd.f32 %v1746_v34, %v3315_v51  ;;  %v1821_v51 = vmul.f32 %v3339_v3, %v3339_v3 }
 0x181   : > { %v1032_v44 = vpop.f32.mrf.mxu0  ;;  %v1160_v45 = vpop.f32.mrf.mxu1 }
 0x182   : > { %2551 = vst [vmem:[%s3279_s23 + $0x38] sm:$0xff] %v2423_v39   ;;  %2567 = vst [vmem:[%s3279_s23 + $0xb8] sm:$0xff] %v2503_v40   ;;  %v1880_v39 = vadd.f32 %v1879_v25, %v1817_v31  ;;  %v1819_v40 = vmul.f32 %v3325_v57, %v3325_v57  ;;  %v1748_v56 = vadd.f32 %v1747_v41, %v3325_v57 }
 0x183   : > { %v3387_v50 = vpop.f32.mrf.mxu0  ;;  %v3389_v53 = vpop.f32.mrf.mxu1  ;;  %v1826_v41 = vmul.f32 %v3371_v35, %v3371_v35 }
 0x184   : > { %v1881_v49 = vadd.f32 %v1880_v39, %v1818_v26  ;;  %v1749_v0 = vadd.f32 %v1748_v56, %v3329_v61 }
 0x185   : > { %v1037_v59 = vpop.f32.mrf.mxu0  ;;  %v1165_v60 = vpop.f32.mrf.mxu1 }
 0x186   : > { %v1882_v59 = vadd.f32 %v1881_v49, %v1819_v40 }
 0x187   : > { %v3398_v2 = vpop.f32.mrf.mxu0  ;;  %v3400_v5 = vpop.f32.mrf.mxu1 }
 0x188   : > { %v2428_v21 = vpack.c.bf16 %v3398_v2, %v3387_v50  ;;  %v2508_v6 = vpack.c.bf16 %v3400_v5, %v3389_v53  ;;  %v1883_v1 = vadd.f32 %v1882_v59, %v1820_v47  ;;  %v1827_v47 = vmul.f32 %v3387_v50, %v3387_v50 }
 0x189   : > { %v1040_v10 = vpop.f32.mrf.mxu0  ;;  %v1168_v11 = vpop.f32.mrf.mxu1 }
 0x18a   : > { %2552 = vst [vmem:[%s3279_s23 + $0x40] sm:$0xff] %v2428_v21   ;;  %2568 = vst [vmem:[%s3279_s23 + $0xc0] sm:$0xff] %v2508_v6   ;;  %v1750_v6 = vadd.f32 %v1749_v0, %v3339_v3  ;;  %v1884_v9 = vadd.f32 %v1883_v1, %v1821_v51  ;;  %v1824_v3 = vmul.f32 %v3357_v19, %v3357_v19 }
 0x18b   : > { %v3414_v16 = vpop.f32.mrf.mxu0  ;;  %v3416_v23 = vpop.f32.mrf.mxu1  ;;  %v1828_v0 = vmul.f32 %v3398_v2, %v3398_v2 }
 0x18c   : > { %v1751_v61 = vadd.f32 %v1750_v6, %v3343_v7  ;;  %v1885_v31 = vadd.f32 %v1884_v9, %v1822_v17  ;;  %v1825_v7 = vmul.f32 %v3367_v29, %v3367_v29 }
 0x18d   : > { %v1045_v33 = vpop.f32.mrf.mxu0  ;;  %v1173_v37 = vpop.f32.mrf.mxu1 }
 0x18e   : > { %v1752_v26 = vadd.f32 %v1751_v61, %v3353_v13  ;;  %v1886_v33 = vadd.f32 %v1885_v31, %v1823_v27 }
 0x18f   : > { %v3424_v43 = vpop.f32.mrf.mxu0  ;;  %v3426_v44 = vpop.f32.mrf.mxu1 }
 0x190   : > { %v2433_v45 = vpack.c.bf16 %v3424_v43, %v3414_v16  ;;  %v2513_v46 = vpack.c.bf16 %v3426_v44, %v3416_v23  ;;  %v1753_v39 = vadd.f32 %v1752_v26, %v3357_v19  ;;  %v1887_v40 = vadd.f32 %v1886_v33, %v1824_v3 }
 0x191   : > { %v1048_v54 = vpop.f32.mrf.mxu0  ;;  %v1176_v55 = vpop.f32.mrf.mxu1  ;;  %v1830_v61 = vmul.f32 %v3424_v43, %v3424_v43 }
 0x192   : > { %2553 = vst [vmem:[%s3279_s23 + $0x48] sm:$0xff] %v2433_v45   ;;  %2569 = vst [vmem:[%s3279_s23 + $0xc8] sm:$0xff] %v2513_v46   ;;  %v1754_v13 = vadd.f32 %v1753_v39, %v3367_v29  ;;  %v1888_v49 = vadd.f32 %v1887_v40, %v1825_v7 }
 0x193   : > { %v3440_v60 = vpop.f32.mrf.mxu0  ;;  %v3442_v63 = vpop.f32.mrf.mxu1 }
 0x194   : > { %v1755_v56 = vadd.f32 %v1754_v13, %v3371_v35  ;;  %v1889_v51 = vadd.f32 %v1888_v49, %v1826_v41  ;;  %v1831_v3 = vmul.f32 %v3440_v60, %v3440_v60 }
 0x195   : > { %v1053_v21 = vpop.f32.mrf.mxu0  ;;  %v1181_v57 = vpop.f32.mrf.mxu1 }
 0x196   : > { %v1756_v29 = vadd.f32 %v1755_v56, %v3387_v50  ;;  %v1890_v21 = vadd.f32 %v1889_v51, %v1827_v47  ;;  %v1829_v57 = vmul.f32 %v3414_v16, %v3414_v16 }
 0x197   : > { %v3450_v10 = vpop.f32.mrf.mxu0  ;;  %v3452_v11 = vpop.f32.mrf.mxu1 }
 0x198   : > { %v2438_v12 = vpack.c.bf16 %v3450_v10, %v3440_v60  ;;  %v2518_v15 = vpack.c.bf16 %v3452_v11, %v3442_v63  ;;  %v1757_v9 = vadd.f32 %v1756_v29, %v3398_v2  ;;  %v1891_v27 = vadd.f32 %v1890_v21, %v1828_v0 }
 0x199   : > { %v1056_v24 = vpop.f32.mrf.mxu0  ;;  %v1184_v25 = vpop.f32.mrf.mxu1  ;;  %v1832_v39 = vmul.f32 %v3450_v10, %v3450_v10 }
 0x19a   : > { %2554 = vst [vmem:[%s3279_s23 + $0x50] sm:$0xff] %v2438_v12   ;;  %2570 = vst [vmem:[%s3279_s23 + $0xd0] sm:$0xff] %v2518_v15   ;;  %v1758_v50 = vadd.f32 %v1757_v9, %v3414_v16  ;;  %v1892_v31 = vadd.f32 %v1891_v27, %v1829_v57 }
 0x19b   : > { %v1059_v37 = vpop.f32.mrf.mxu0  ;;  %v3466_v34 = vpop.f32.mrf.mxu1 }
 0x19c   : > { %v1759_v26 = vadd.f32 %v1758_v50, %v3424_v43  ;;  %v1893_v7 = vadd.f32 %v1892_v31, %v1830_v61 }
 0x19d   : > { %v1061_v45 = vpop.f32.mrf.mxu0  ;;  %v1189_v46 = vpop.f32.mrf.mxu1 }
 0x19e   : > { %v1760_v16 = vadd.f32 %v1759_v26, %v3440_v60  ;;  %v1894_v45 = vadd.f32 %v1893_v7, %v1831_v3  ;;  %v1833_v46 = vmul.f32 %v1059_v37, %v1059_v37 }
 0x19f   : > { %v1062_v54 = vpop.f32.mrf.mxu0  ;;  %v3474_v55 = vpop.f32.mrf.mxu1 }
 0x1a0   : > { %v2443_v19 = vpack.c.bf16 %v1062_v54, %v1059_v37  ;;  %v2523_v59 = vpack.c.bf16 %v3474_v55, %v3466_v34  ;;  %v1761_v43 = vadd.f32 %v1760_v16, %v3450_v10  ;;  %v1895_v47 = vadd.f32 %v1894_v45, %v1832_v39 }
 0x1a1   : > { %v1064_v1 = vpop.f32.mrf.mxu0  ;;  %v1192_v17 = vpop.f32.mrf.mxu1  ;;  %v1834_v56 = vmul.f32 %v1062_v54, %v1062_v54 }
 0x1a2   : > { %2555 = vst [vmem:[%s3279_s23 + $0x58] sm:$0xff] %v2443_v19   ;;  %2571 = vst [vmem:[%s3279_s23 + $0xd8] sm:$0xff] %v2523_v59   ;;  %v1762_v51 = vadd.f32 %v1761_v43, %v1059_v37  ;;  %v1896_v0 = vadd.f32 %v1895_v47, %v1833_v46 }
 0x1a3   : > { %v1067_v6 = vpop.f32.mrf.mxu0  ;;  %v3486_v35 = vpop.f32.mrf.mxu1 }
 0x1a4   : > { %v1835_v1 = vmul.f32 %v1067_v6, %v1067_v6  ;;  %v1763_v29 = vadd.f32 %v1762_v51, %v1062_v54  ;;  %v1897_v9 = vadd.f32 %v1896_v0, %v1834_v56 }
 0x1a5   : > { %v1069_v12 = vpop.f32.mrf.mxu0  ;;  %v1197_v15 = vpop.f32.mrf.mxu1 }
 0x1a6   : > { %v1764_v12 = vadd.f32 %v1763_v29, %v1067_v6  ;;  %v1898_v15 = vadd.f32 %v1897_v9, %v1835_v1 }
 0x1a7   : > { %v1070_v24 = vpop.f32.mrf.mxu0  ;;  %v3494_v25 = vpop.f32.mrf.mxu1 }
 0x1a8   : > { %v2448_v2 = vpack.c.bf16 %v1070_v24, %v1067_v6  ;;  %v2528_v33 = vpack.c.bf16 %v3494_v25, %v3486_v35  ;;  %v1836_v27 = vmul.f32 %v1070_v24, %v1070_v24  ;;  %v1765_v3 = vadd.f32 %v1764_v12, %v1070_v24 }
 0x1a9   : > { %v1072_v40 = vpop.f32.mrf.mxu0  ;;  %v1200_v41 = vpop.f32.mrf.mxu1 }
 0x1aa   : > { %2556 = vst [vmem:[%s3279_s23 + $0x60] sm:$0xff] %v2448_v2   ;;  %2572 = vst [vmem:[%s3279_s23 + $0xe0] sm:$0xff] %v2528_v33   ;;  %v1899_v26 = vadd.f32 %v1898_v15, %v1836_v27 }
 0x1ab   : > { %v1075_v13 = vpop.f32.mrf.mxu0  ;;  %v3504_v49 = vpop.f32.mrf.mxu1 }
 0x1ac   : > { %v1837_v50 = vmul.f32 %v1075_v13, %v1075_v13  ;;  %v1766_v7 = vadd.f32 %v1765_v3, %v1075_v13 }
 0x1ad   : > { %v1077_v19 = vpop.f32.mrf.mxu0  ;;  %v1205_v59 = vpop.f32.mrf.mxu1 }
 0x1ae   : > { %v1900_v39 = vadd.f32 %v1899_v26, %v1837_v50  ;;  %v1843_v26 = vmul.f32 %v3268_v18, %v3268_v18 }
 0x1af   : > { %v1078_v17 = vpop.f32.mrf.mxu0  ;;  %v3507_v60 = vpop.f32.mrf.mxu1 }
 0x1b0   : > { %v2453_v21 = vpack.c.bf16 %v1078_v17, %v1075_v13  ;;  %v2533_v57 = vpack.c.bf16 %v3507_v60, %v3504_v49  ;;  %v1838_v2 = vmul.f32 %v1078_v17, %v1078_v17  ;;  %v1767_v6 = vadd.f32 %v1766_v7, %v1078_v17 }
 0x1b1   : > { %v1080_v10 = vpop.f32.mrf.mxu0  ;;  %v1208_v61 = vpop.f32.mrf.mxu1 }
 0x1b2   : > { %2557 = vst [vmem:[%s3279_s23 + $0x68] sm:$0xff] %v2453_v21   ;;  %2573 = vst [vmem:[%s3279_s23 + $0xe8] sm:$0xff] %v2533_v57   ;;  %v1901_v24 = vadd.f32 %v1900_v39, %v1838_v2 }
 0x1b3   : > { %v1083_v37 = vpop.f32.mrf.mxu0  ;;  %v3513_v31 = vpop.f32.mrf.mxu1 }
 0x1b4   : > { %v1839_v40 = vmul.f32 %v1083_v37, %v1083_v37  ;;  %v1768_v19 = vadd.f32 %v1767_v6, %v1083_v37 }
 0x1b5   : > { %v1085_v54 = vpop.f32.mrf.mxu0  ;;  %v1213_v33 = vpop.f32.mrf.mxu1 }
 0x1b6   : > { %v1902_v13 = vadd.f32 %v1901_v24, %v1839_v40 }
 0x1b7   : > { %v1086_v41 = vpop.f32.mrf.mxu0  ;;  %v3515_v16 = vpop.f32.mrf.mxu1 }
 0x1b8   : > { %v2458_v45 = vpack.c.bf16 %v1086_v41, %v1083_v37  ;;  %v2538_v46 = vpack.c.bf16 %v3515_v16, %v3513_v31  ;;  %v1840_v43 = vmul.f32 %v1086_v41, %v1086_v41  ;;  %v1769_v0 = vadd.f32 %v1768_v19, %v1086_v41 }
 0x1b9   : > { %v1088_v47 = vpop.f32.mrf.mxu0  ;;  %v1216_v56 = vpop.f32.mrf.mxu1 }
 0x1ba   : > { %2558 = vst [vmem:[%s3279_s23 + $0x70] sm:$0xff] %v2458_v45   ;;  %2574 = vst [vmem:[%s3279_s23 + $0xf0] sm:$0xff] %v2538_v46   ;;  %v1903_v17 = vadd.f32 %v1902_v13, %v1840_v43 }
 0x1bb   : > { %v1091_v59 = vpop.f32.mrf.mxu0  ;;  %v3521_v51 = vpop.f32.mrf.mxu1 }
 0x1bc   : > { %v1841_v1 = vmul.f32 %v1091_v59, %v1091_v59  ;;  %v1770_v57 = vadd.f32 %v1769_v0, %v1091_v59 }
 0x1bd   : > { %v1093_v29 = vpop.f32.mrf.mxu0  ;;  %v1221_v21 = vpop.f32.mrf.mxu1 }
 0x1be   : > { %v1904_v9 = vadd.f32 %v1903_v17, %v1841_v1 }
 0x1bf   : > { %v1094_v27 = vpop.f32.mrf.mxu0  ;;  %v3525_v10 = vpop.f32.mrf.mxu1 }
 0x1c0   : > { %v2463_v61 = vpack.c.bf16 %v1094_v27, %v1091_v59  ;;  %v1771_v12 = vadd.f32 %v1770_v57, %v1094_v27  ;;  %v1842_v15 = vmul.f32 %v1094_v27, %v1094_v27  ;;  %v2543_v50 = vpack.c.bf16 %v3525_v10, %v3521_v51 }
 0x1c1   : > { %v1096_v37 = vpop.f32.mrf.mxu0  ;;  %v1224_v3 = vpop.f32.mrf.mxu1 }
 0x1c2   : > { %2559 = vst [vmem:[%s3279_s23 + $0x78] sm:$0xff] %v2463_v61   ;;  %v1772_v2 = vadd.f32 %v1771_v12, %v3268_v18  ;;  %v1905_v54 = vadd.f32 %v1904_v9, %v1842_v15  ;;  %2575 = vst [vmem:[%s3279_s23 + $0xf8] sm:$0xff] %v2543_v50  }
 0x1c3   : > { %2877 = shalt.err (!%p2874_p2)
}
 0x1c4   : > { %s2878_s28 = scalar_lea.hbm %s3530_s8, 4096  ;;  %s2882_s22 = scalar_lea.hbm %s3750_s2, 8192 }
 0x1c5   : > { %p2879_p6 = scmp.ne.s32.totalorder %s3530_s8, %s2878_s28  ;;  %p2883_p11 = scmp.lt.s32.totalorder %s3530_s8, %s3750_s2 }
 0x1c6   : > { %p2884_p1 = scmp.lt.s32.totalorder %s2882_s22, %s2878_s28 }
 0x1c7   : > { %p2880_p9 = pnand %p2879_p6, %p3128_p0 }
 0x1c8   : > { %p2885_p8 = por %p2884_p1, %p2883_p11 }
 0x1c9   : > { %p2881_p13 = pneg %p2880_p9 }
 0x1cb   : > { %p2886_p4 = pnand %p2885_p8, %p2881_p13 }
 0x1cd   : > { %2889 = shalt.err (!%p2886_p4)
}
 0x1ce   : > { %s3014_s6 = smov 64   ;;  %s3015_s7 = smov 4   ;;  %v1844_v18 = vmul.f32 %v3273_v22, %v3273_v22  ;;  %v1773_v33 = vadd.f32 %v1772_v2, %v3273_v22  ;;  %v1906_v7 = vadd.f32 %v1905_v54, %v1843_v26  ;;  %v1845_v39 = vmul.f32 %v3285_v28, %v3285_v28 }
 0x1cf   : > { %2614 = dma.vmem_to_hbm [thread:$0]  (%p3128_p0), %s3532_s5, 4096, %s3530_s8, %s1946_s12, %s3014_s6, %s3014_s6, %s3015_s7   ;;  %v1846_v6 = vmul.f32 %v3289_v32, %v3289_v32  ;;  %v1847_v24 = vmul.f32 %v3299_v38, %v3299_v38  ;;  %v1848_v22 = vmul.f32 %v3303_v42, %v3303_v42 }
 0x1d0   : > { %v1774_v40 = vadd.f32 %v1773_v33, %v3285_v28  ;;  %v1907_v41 = vadd.f32 %v1906_v7, %v1844_v18  ;;  %v1849_v28 = vmul.f32 %v3313_v48, %v3313_v48  ;;  %s1950_s5 = sand.u32 1, %s3074_s21   ;;  %s2314_s8 = sshll.u32 %s2996_s18, 4 }
 0x1d1   : > { %s281_s12 = scalar_lea.vmem [#allocation9], %s3156_s13  ;;  %s287_s27 = scalar_lea.vmem [#allocation11], %s3156_s13 }
 0x1d2   : > { %v1775_v45 = vadd.f32 %v1774_v40, %v3289_v32  ;;  %v1908_v46 = vadd.f32 %v1907_v41, %v1845_v39  ;;  %v1850_v32 = vmul.f32 %v3317_v52, %v3317_v52  ;;  %v1860_v39 = vmul.f32 %v3400_v5, %v3400_v5  ;;  %s1985_s9 = sshll.u32 %s281_s12, 4  ;;  %s1999_s10 = sshll.u32 %s287_s27, 4  ;;  %s3668_s9 = int_to_ptr.vmem [resolvable:$true] %s1985_s9  ;;  %s3675_s10 = int_to_ptr.vmem [resolvable:$true] %s1999_s10 }
 0x1d3   : > { %s3666_s1 = scalar_lea.hbm %s3751_s3, %s2314_s8  ;;  %s3673_s30 = scalar_lea.hbm %s3752_s4, %s2314_s8 }
 0x1d4   : > { %v1776_v43 = vadd.f32 %v1775_v45, %v3299_v38  ;;  %v1909_v47 = vadd.f32 %v1908_v46, %v1846_v6  ;;  %v1851_v38 = vmul.f32 %v3327_v58, %v3327_v58  ;;  %v1861_v6 = vmul.f32 %v3416_v23, %v3416_v23  ;;  %s3677_s22 = scalar_lea.sflag [#allocation10], %s1950_s5  ;;  %s2890_s23 = scalar_lea.vmem %s3668_s9, 16 }
 0x1d5   : > { %v1862_v46 = vmul.f32 %v3426_v44, %v3426_v44  ;;  %p2891_p10 = scmp.ne.s32.totalorder %s3668_s9, %s2890_s23  ;;  %s3016_s25 = smov [#allocation9]  }
 0x1d6   : > { %v1777_v56 = vadd.f32 %v1776_v43, %v3303_v42  ;;  %v1910_v19 = vadd.f32 %v1909_v47, %v1847_v24  ;;  %v1852_v42 = vmul.f32 %v3331_v62, %v3331_v62  ;;  %v1863_v43 = vmul.f32 %v3442_v63, %v3442_v63  ;;  %s2894_s6 = sshll.u32 %s3016_s25, 4  ;;  %s2895_s6 = int_to_ptr.vmem [resolvable:$false] %s2894_s6 }
 0x1d7   : > { %p2892_p12 = pnand %p2891_p10, %p3128_p0  ;;  %s2896_s7 = scalar_lea.vmem %s2895_s6, 32 }
 0x1d8   : > { %v1778_v13 = vadd.f32 %v1777_v56, %v3313_v48  ;;  %v1911_v59 = vadd.f32 %v1910_v19, %v1848_v22  ;;  %v1853_v48 = vmul.f32 %v3341_v4, %v3341_v4  ;;  %v1864_v22 = vmul.f32 %v3452_v11, %v3452_v11  ;;  %p2897_p5 = scmp.lt.s32.totalorder %s3668_s9, %s2895_s6  ;;  %p2898_p7 = scmp.lt.s32.totalorder %s2896_s7, %s2890_s23 }
 0x1d9   : > { %v1865_v19 = vmul.f32 %v3466_v34, %v3466_v34  ;;  %p2893_p3 = pneg %p2892_p12 }
 0x1da   : > { %v1779_v0 = vadd.f32 %v1778_v13, %v3317_v52  ;;  %v1912_v1 = vadd.f32 %v1911_v59, %v1849_v28  ;;  %v1854_v52 = vmul.f32 %v3345_v8, %v3345_v8  ;;  %v1866_v13 = vmul.f32 %v3474_v55, %v3474_v55  ;;  %p2899_p2 = por %p2898_p7, %p2897_p5 }
 0x1dc   : > { %v1913_v17 = vadd.f32 %v1912_v1, %v1850_v32  ;;  %v1780_v29 = vadd.f32 %v1779_v0, %v3327_v58  ;;  %v1855_v58 = vmul.f32 %v3355_v14, %v3355_v14  ;;  %v1867_v32 = vmul.f32 %v3486_v35, %v3486_v35  ;;  %p2900_p6 = pnand %p2899_p2, %p2893_p3 }
 0x1dd   : > { %v1868_v1 = vmul.f32 %v3494_v25, %v3494_v25 }
 0x1de   : > { %v1781_v21 = vadd.f32 %v1780_v29, %v3331_v62  ;;  %v1914_v57 = vadd.f32 %v1913_v17, %v1851_v38  ;;  %v1856_v62 = vmul.f32 %v3359_v20, %v3359_v20  ;;  %v1869_v17 = vmul.f32 %v3504_v49, %v3504_v49 }
 0x1e0   : > { %v1782_v9 = vadd.f32 %v1781_v21, %v3341_v4  ;;  %v1915_v27 = vadd.f32 %v1914_v57, %v1852_v42  ;;  %v1857_v4 = vmul.f32 %v3369_v30, %v3369_v30  ;;  %v1870_v42 = vmul.f32 %v3507_v60, %v3507_v60 }
 0x1e1   : > { %v1871_v57 = vmul.f32 %v3513_v31, %v3513_v31 }
 0x1e2   : > { %v1783_v61 = vadd.f32 %v1782_v9, %v3345_v8  ;;  %v1916_v12 = vadd.f32 %v1915_v27, %v1853_v48  ;;  %v1858_v8 = vmul.f32 %v3373_v36, %v3373_v36  ;;  %v1872_v9 = vmul.f32 %v3515_v16, %v3515_v16 }
 0x1e4   : > { %v1784_v15 = vadd.f32 %v1783_v61, %v3355_v14  ;;  %v1917_v50 = vadd.f32 %v1916_v12, %v1854_v52  ;;  %v1859_v14 = vmul.f32 %v3389_v53, %v3389_v53 }
 0x1e6   : > { %v1785_v37 = vadd.f32 %v1784_v15, %v3359_v20  ;;  %v1918_v3 = vadd.f32 %v1917_v50, %v1855_v58 }
 0x1e8   : > { %v1786_v26 = vadd.f32 %v1785_v37, %v3369_v30  ;;  %v1919_v2 = vadd.f32 %v1918_v3, %v1856_v62 }
 0x1ea   : > { %v1787_v54 = vadd.f32 %v1786_v26, %v3373_v36  ;;  %v1920_v18 = vadd.f32 %v1919_v2, %v1857_v4 }
 0x1ec   : > { %v1788_v33 = vadd.f32 %v1787_v54, %v3389_v53  ;;  %v1921_v7 = vadd.f32 %v1920_v18, %v1858_v8 }
 0x1ee   : > { %v1789_v20 = vadd.f32 %v1788_v33, %v3400_v5  ;;  %v1922_v40 = vadd.f32 %v1921_v7, %v1859_v14 }
 0x1f0   : > { %v1923_v30 = vadd.f32 %v1922_v40, %v1860_v39  ;;  %v1790_v41 = vadd.f32 %v1789_v20, %v3416_v23 }
 0x1f2   : > { %v1924_v36 = vadd.f32 %v1923_v30, %v1861_v6  ;;  %v1791_v45 = vadd.f32 %v1790_v41, %v3426_v44 }
 0x1f4   : > { %v1925_v53 = vadd.f32 %v1924_v36, %v1862_v46  ;;  %v1792_v24 = vadd.f32 %v1791_v45, %v3442_v63 }
 0x1f6   : > { %v1926_v5 = vadd.f32 %v1925_v53, %v1863_v43  ;;  %v1793_v47 = vadd.f32 %v1792_v24, %v3452_v11 }
 0x1f8   : > { %v1927_v56 = vadd.f32 %v1926_v5, %v1864_v22  ;;  %v1794_v23 = vadd.f32 %v1793_v47, %v3466_v34 }
 0x1fa   : > { %v1928_v28 = vadd.f32 %v1927_v56, %v1865_v19  ;;  %v1795_v44 = vadd.f32 %v1794_v23, %v3474_v55 }
 0x1fc   : > { %v1929_v59 = vadd.f32 %v1928_v28, %v1866_v13  ;;  %v1796_v63 = vadd.f32 %v1795_v44, %v3486_v35 }
 0x1fe   : > { %v1930_v0 = vadd.f32 %v1929_v59, %v1867_v32  ;;  %v1797_v11 = vadd.f32 %v1796_v63, %v3494_v25 }
 0x200   : > { %v1931_v38 = vadd.f32 %v1930_v0, %v1868_v1  ;;  %v1798_v34 = vadd.f32 %v1797_v11, %v3504_v49 }
 0x202   : > { %v1932_v29 = vadd.f32 %v1931_v38, %v1869_v17  ;;  %v1799_v55 = vadd.f32 %v1798_v34, %v3507_v60  ;;  %v1873_v60 = vmul.f32 %v3521_v51, %v3521_v51 }
 0x204   : > { %v1933_v21 = vadd.f32 %v1932_v29, %v1870_v42  ;;  %v1800_v35 = vadd.f32 %v1799_v55, %v3513_v31  ;;  %v1874_v31 = vmul.f32 %v3525_v10, %v3525_v10 }
 0x206   : > { %v1934_v48 = vadd.f32 %v1933_v21, %v1871_v57  ;;  %v1801_v25 = vadd.f32 %v1800_v35, %v3515_v16 }
 0x208   : > { %v1935_v49 = vadd.f32 %v1934_v48, %v1872_v9  ;;  %v1802_v27 = vadd.f32 %v1801_v25, %v3521_v51 }
 0x20a   : > { %v1936_v52 = vadd.f32 %v1935_v49, %v1873_v60  ;;  %v1803_v61 = vadd.f32 %v1802_v27, %v3525_v10 }
 0x20c   : > { %v1804_v12 = vrot.slane %v1803_v61, 4  ;;  %v1937_v58 = vadd.f32 %v1936_v52, %v1874_v31 }
 0x20e   : > { %v1805_v15 = vadd.f32 %v1804_v12, %v1803_v61  ;;  %v1938_v16 = vrot.slane %v1937_v58, 4 }
 0x210   : > { %v1806_v50 = vrot.slane %v1805_v15, 2  ;;  %v1939_v62 = vadd.f32 %v1938_v16, %v1937_v58 }
 0x212   : > { %v1807_v37 = vadd.f32 %v1806_v50, %v1805_v15  ;;  %v1940_v3 = vrot.slane %v1939_v62, 2 }
 0x214   : > { %v1808_v51 = vrot.slane %v1807_v37, 1  ;;  %v1941_v4 = vadd.f32 %v1940_v3, %v1939_v62 }
 0x216   : > { %v1809_v10 = vadd.f32 %v1808_v51, %v1807_v37  ;;  %v1942_v26 = vrot.slane %v1941_v4, 1 }
 0x218   : > { %v1943_v2 = vadd.f32 %v1942_v26, %v1941_v4  ;;  %1810 = vst [vmem:[%s281_s12] sm:$0x1] %v1809_v10 }
 0x219   : > { %2903 = shalt.err (!%p2900_p6)
}
 0x21a   : > { %s2904_s5 = scalar_lea.hbm %s3666_s1, 16  ;;  %s2908_s14 = scalar_lea.hbm %s3751_s3, 32 }
 0x21b   : > { %p2905_p9 = scmp.ne.s32.totalorder %s3666_s1, %s2904_s5  ;;  %p2909_p1 = scmp.lt.s32.totalorder %s3666_s1, %s3751_s3 }
 0x21c   : > { %p2910_p8 = scmp.lt.s32.totalorder %s2908_s14, %s2904_s5 }
 0x21d   : > { %p2906_p13 = pnand %p2905_p9, %p3128_p0 }
 0x21e   : > { %p2911_p4 = por %p2910_p8, %p2909_p1 }
 0x21f   : > { %p2907_p11 = pneg %p2906_p13 }
 0x221   : > { %p2912_p10 = pnand %p2911_p4, %p2907_p11 }
 0x223   : > { %2915 = shalt.err (!%p2912_p10)
}
 0x224   : > { %2615 = dma.vmem_to_hbm [thread:$0]  (%p3128_p0), %s3668_s9, 16, %s3666_s1, %s3677_s22   ;;  %1944 = vst [vmem:[%s287_s27] sm:$0x1] %v1943_v2 }
 0x225   : > { %s2916_s21 = scalar_lea.vmem %s3675_s10, 16  ;;  %s3017_s23 = smov [#allocation11]  }
 0x226   : > { %p2917_p12 = scmp.ne.s32.totalorder %s3675_s10, %s2916_s21  ;;  %s2920_s25 = sshll.u32 %s3017_s23, 4  ;;  %s2921_s25 = int_to_ptr.vmem [resolvable:$false] %s2920_s25 }
 0x227   : > { %s2922_s6 = scalar_lea.vmem %s2921_s25, 32  ;;  %p2923_p7 = scmp.lt.s32.totalorder %s3675_s10, %s2921_s25 }
 0x228   : > { %p2918_p3 = pnand %p2917_p12, %p3128_p0  ;;  %p2924_p2 = scmp.lt.s32.totalorder %s2922_s6, %s2916_s21 }
 0x22a   : > { %p2919_p5 = pneg %p2918_p3  ;;  %p2925_p6 = por %p2924_p2, %p2923_p7 }
 0x22c   : > { %p2926_p9 = pnand %p2925_p6, %p2919_p5 }
 0x22e   : > { %2929 = shalt.err (!%p2926_p9)
}
 0x22f   : > { %s2930_s13 = scalar_lea.hbm %s3673_s30, 16  ;;  %s2934_s1 = scalar_lea.hbm %s3752_s4, 32 }
 0x230   : > { %p2931_p13 = scmp.ne.s32.totalorder %s3673_s30, %s2930_s13  ;;  %p2935_p8 = scmp.lt.s32.totalorder %s3673_s30, %s3752_s4 }
 0x231   : > { %p2936_p4 = scmp.lt.s32.totalorder %s2934_s1, %s2930_s13 }
 0x232   : > { %p2932_p11 = pnand %p2931_p13, %p3128_p0 }
 0x233   : > { %p2937_p10 = por %p2936_p4, %p2935_p8 }
 0x234   : > { %p2933_p1 = pneg %p2932_p11 }
 0x236   : > { %p2938_p12 = pnand %p2937_p10, %p2933_p1 }
 0x238   : > { %2941 = shalt.err (!%p2938_p12)
}
 0x239   : > { %2616 = dma.vmem_to_hbm [thread:$0]  (%p3128_p0), %s3675_s10, 16, %s3673_s30, %s3677_s22  }
 0x23a PF: > { %s2011_s8 = sand.u32 1, %s2984_s15   ;;  %p3767_p3 = scmp.ne.s32.totalorder %s3757_s24, 0 }
 0x23b   : > { %p3768_p5 = scmp.ge.s32.totalorder %s3004_s20, 2  ;;  %s2012_s12 = scalar_lea.sflag [#allocation5], %s2011_s8 }
 0x23d   : > { %p2629_p7 = pnand %p3768_p5, %p3767_p3 }
 0x23f   : > { %p2630_p2 = pneg %p2629_p7 }
 0x241   : > { %2975 = dma.done.wait (%p2630_p2), %s2012_s12, 4096  }
 0x242   : > { %2977 = vsyncadd (%p2630_p2), %s2012_s12, 4294963200  ;;  %s3769_s14 = sadd.s32 4294967294, %s3004_s20  }
 0x243   : > { %s2020_s28 = sand.u32 1, %s3769_s14  }
 0x244   : > { %s2021_s11 = scalar_lea.sflag [#allocation10], %s2020_s28 }
 0x245   : > { %2979 = dma.done.wait (%p2630_p2), %s2021_s11, 32  }
 0x246   : > { %2981 = vsyncadd (%p2630_p2), %s2021_s11, 4294967264  ;;  %s25_s20 = sadd.s32 1, %s3004_s20   ;;  %s3770_s15 = smov %s2988_s16 }
 0x247   : > { %p22_p0 = scmp.ge.s32.totalorder %s25_s20, 4   ;;  %s3771_s16 = smov %s2992_s17 }
 0x248   : > { %s3772_s17 = smov %s3137_s26  ;;  %s3773_s18 = smov %s3000_s19 }
 0x249   : > { %s3774_s19 = smov %s3776_s29  ;;  %24 = sbr.rel (!%p22_p0) target bundleno = 11 (0xb), region = 118 }
 0x24e   :  { %2033 = vsyncpa [#allocation4], 1 }
 0x24f   :  { %2035 = vsyncpa [#allocation4 + $0x1], 1 }
 0x250   :  { %2036 = vsyncpa [#allocation7], 1 }
 0x251   :  { %2037 = vsyncpa [#allocation5], 1 }
 0x252   :  { %2039 = vsyncpa [#allocation5 + $0x1], 1 }
 0x253   :  { %2040 = vsyncpa [#allocation10], 1 }
 0x254   :  { %2042 = vsyncpa [#allocation10 + $0x1], 1 }

</bundles_post_ra>
